<compile_context>
chip_gen: v7x
topology: tpu7x:2x2x1
jax: 0.10.0
libtpu: 0.0.40
codegen_flags: <defaults>
</compile_context>

<pallas_src>
import functools
import math

import jax
import jax.numpy as jnp
from jax.experimental import pallas as pl
from jax.experimental.pallas import tpu as pltpu  # noqa: F401  (TPU backend)

D_MODEL = 32
N_HEADS = 4
D_K = D_MODEL // N_HEADS
D_FF = 64
EPS = 1e-6
NEG_INF = -1e9


# ----------------------------------------------------------- fused kernel
def _decoder_layer_kernel(
        x_ref, mem_ref, tmask_ref, smask_ref,
        lng_ref, lnb_ref,
        wqkv_s_ref, bqkv_s_ref, wo_s_ref, bo_s_ref,
        wq_x_ref, bq_x_ref, wkv_x_ref, bkv_x_ref, wo_x_ref, bo_x_ref,
        w1_ref, b1_ref, w2_ref, b2_ref,
        o_ref, *, B, T, S):
    x = x_ref[...].astype(jnp.float32)        # [B*T, D]
    mem = mem_ref[...].astype(jnp.float32)    # [B*S, D]

    # Additive mask biases, computed ONCE per sublayer (hoisted out of the
    # head loops): 0 where kept, -1e9 where masked.  Identical to masked_fill
    # for any row with >= 1 unmasked entry (masked exps underflow to 0 either
    # way); fully-masked rows do not occur for these masks.
    tbias = jnp.where(tmask_ref[...] > 0, 0.0, NEG_INF)   # [B, T, T]
    sbias = jnp.where(smask_ref[...] > 0, 0.0, NEG_INF)   # [B, T, S]

    def layer_norm(h, idx):
        # torch.Tensor.std is the unbiased estimator (divide by N-1) and the
        # reference divides by (std + eps), not sqrt(var + eps).
        g = lng_ref[idx]                      # [1, D]
        b = lnb_ref[idx]                      # [1, D]
        mean = jnp.mean(h, axis=-1, keepdims=True)
        var = jnp.sum((h - mean) ** 2, axis=-1, keepdims=True) / (h.shape[-1] - 1)
        return g * (h - mean) / (jnp.sqrt(var) + EPS) + b

    scale = 1.0 / math.sqrt(D_K)

    def attend(q2d, k2d, v2d, bias, wo_ref, bo_ref, s_len):
        # One K transpose per sublayer (XLU slot), 4 small score/ctx matmuls
        # per batch element, heads lane-concatenated so the output projection
        # is a single contraction-D MXU matmul over the whole [B*T, D] ctx.
        kt = k2d.T                                          # [D, B*S]
        ctx_rows = []
        for b in range(B):
            qb = q2d[b * T:(b + 1) * T, :]                  # [T, D]
            vb = v2d[b * s_len:(b + 1) * s_len, :]          # [S, D]
            bb = bias[b]                                    # [T, S]
            heads = []
            for h in range(N_HEADS):
                lo, hi = h * D_K, (h + 1) * D_K
                s = jnp.dot(qb[:, lo:hi],
                            kt[lo:hi, b * s_len:(b + 1) * s_len],
                            preferred_element_type=jnp.float32) * scale + bb
                s = s - jnp.max(s, axis=-1, keepdims=True)
                p = jnp.exp(s)
                p = p / jnp.sum(p, axis=-1, keepdims=True)
                heads.append(jnp.dot(p, vb[:, lo:hi],
                                     preferred_element_type=jnp.float32))
            ctx_rows.append(jnp.concatenate(heads, axis=-1))   # [T, D]
        ctx = jnp.concatenate(ctx_rows, axis=0)                # [B*T, D]
        return jnp.dot(ctx, wo_ref[...],
                       preferred_element_type=jnp.float32) + bo_ref[...]

    # ---- sublayer 0: self-attention (q = k = v = LN(x)) ----
    nx = layer_norm(x, 0)
    qkv = jnp.dot(nx, wqkv_s_ref[...],
                  preferred_element_type=jnp.float32) + bqkv_s_ref[...]   # [B*T, 3D]
    x = x + attend(qkv[:, 0:D_MODEL],
                   qkv[:, D_MODEL:2 * D_MODEL],
                   qkv[:, 2 * D_MODEL:3 * D_MODEL],
                   tbias, wo_s_ref, bo_s_ref, T)

    # ---- sublayer 1: cross-attention (q = LN(x); k = v = memory) ----
    nx = layer_norm(x, 1)
    q = jnp.dot(nx, wq_x_ref[...],
                preferred_element_type=jnp.float32) + bq_x_ref[...]       # [B*T, D]
    kv = jnp.dot(mem, wkv_x_ref[...],
                 preferred_element_type=jnp.float32) + bkv_x_ref[...]     # [B*S, 2D]
    x = x + attend(q, kv[:, 0:D_MODEL], kv[:, D_MODEL:2 * D_MODEL],
                   sbias, wo_x_ref, bo_x_ref, S)

    # ---- sublayer 2: position-wise feed forward ----
    nx = layer_norm(x, 2)
    h1 = jnp.dot(nx, w1_ref[...], preferred_element_type=jnp.float32) + b1_ref[...]
    h1 = jnp.maximum(h1, 0.0)                 # ReLU
    x = x + jnp.dot(h1, w2_ref[...], preferred_element_type=jnp.float32) + b2_ref[...]

    o_ref[...] = x.astype(o_ref.dtype)


# ------------------------------------------------------------ param fusion
def fuse_params(p):
    """One-time fusion of weights (hoisted out of the per-call path)."""
    wq, bq, wk, bk, wv, bv, wo_s, bo_s = p["self_attn"]
    wq2, bq2, wk2, bk2, wv2, bv2, wo_x, bo_x = p["src_attn"]
    w1, b1, w2, b2 = p["ffn"]
    return {
        "lng": jnp.stack([p["ln0_g"], p["ln1_g"], p["ln2_g"]])[:, None, :],  # [3,1,D]
        "lnb": jnp.stack([p["ln0_b"], p["ln1_b"], p["ln2_b"]])[:, None, :],  # [3,1,D]
        "wqkv_s": jnp.concatenate([wq, wk, wv], axis=1),      # [D, 3D]
        "bqkv_s": jnp.concatenate([bq, bk, bv], axis=1),      # [1, 3D]
        "wo_s": wo_s, "bo_s": bo_s,
        "wq_x": wq2, "bq_x": bq2,
        "wkv_x": jnp.concatenate([wk2, wv2], axis=1),         # [D, 2D]
        "bkv_x": jnp.concatenate([bk2, bv2], axis=1),         # [1, 2D]
        "wo_x": wo_x, "bo_x": bo_x,
        "w1": w1, "b1": b1, "w2": w2, "b2": b2,
    }


# ------------------------------------------------------------ wrapper
def decoder_layer(x, memory, src_mask, tgt_mask, fp):
    B, T, D = x.shape
    S = memory.shape[1]

    # Stack batch+time so every projection runs as one denser MXU matmul.
    x2d = x.reshape(B * T, D)
    mem2d = memory.reshape(B * S, D)

    kernel = functools.partial(_decoder_layer_kernel, B=B, T=T, S=S)

    out2d = pl.pallas_call(
        kernel,
        out_shape=jax.ShapeDtypeStruct((B * T, D), x.dtype),
        # No grid: single invocation, all operands resident in VMEM
        # (weights + activations ~60 KB total, far under the scoped limit).
        input_output_aliases={0: 0},     # reuse x's buffer for the output
    )(x2d, mem2d, tgt_mask, src_mask,
      fp["lng"], fp["lnb"],
      fp["wqkv_s"], fp["bqkv_s"], fp["wo_s"], fp["bo_s"],
      fp["wq_x"], fp["bq_x"], fp["wkv_x"], fp["bkv_x"], fp["wo_x"], fp["bo_x"],
      fp["w1"], fp["b1"], fp["w2"], fp["b2"])
    return out2d.reshape(B, T, D)


# -------------------------------------------------- pure-JAX reference check
def _ln_ref(x, g, b):
    mean = jnp.mean(x, -1, keepdims=True)
    var = jnp.sum((x - mean) ** 2, -1, keepdims=True) / (x.shape[-1] - 1)
    return g * (x - mean) / (jnp.sqrt(var) + EPS) + b


def _mha_ref(q_in, kv_in, mask, params):
    wq, bq, wk, bk, wv, bv, wo, bo = params
    q = q_in @ wq + bq
    k = kv_in @ wk + bk
    v = kv_in @ wv + bv
    B, T, D = q.shape
    S = k.shape[1]
    q = q.reshape(B, T, N_HEADS, D_K).transpose(0, 2, 1, 3)
    k = k.reshape(B, S, N_HEADS, D_K).transpose(0, 2, 1, 3)
    v = v.reshape(B, S, N_HEADS, D_K).transpose(0, 2, 1, 3)
    s = jnp.einsum("bhtd,bhsd->bhts", q, k) / math.sqrt(D_K)
    s = jnp.where(mask[:, None, :, :] > 0, s, NEG_INF)
    p = jax.nn.softmax(s, axis=-1)
    o = jnp.einsum("bhts,bhsd->bhtd", p, v).transpose(0, 2, 1, 3).reshape(B, T, D)
    return o @ wo + bo


def decoder_layer_ref(x, memory, src_mask, tgt_mask, p):
    nx = _ln_ref(x, p["ln0_g"], p["ln0_b"])
    x = x + _mha_ref(nx, nx, tgt_mask, p["self_attn"])
    nx = _ln_ref(x, p["ln1_g"], p["ln1_b"])
    x = x + _mha_ref(nx, memory, src_mask, p["src_attn"])
    nx = _ln_ref(x, p["ln2_g"], p["ln2_b"])
    w1, b1, w2, b2 = p["ffn"]
    x = x + (jnp.maximum(nx @ w1 + b1, 0.0) @ w2 + b2)
    return x


# -------------------------------------------------------------- parameters
def init_params(key):
    def lin(k, din, dout):
        w = jax.random.normal(k, (din, dout), jnp.float32) / math.sqrt(din)
        b = jnp.zeros((1, dout), jnp.float32)
        return w, b

    keys = jax.random.split(key, 10)
    wq, bq = lin(keys[0], D_MODEL, D_MODEL)
    wk, bk = lin(keys[1], D_MODEL, D_MODEL)
    wv, bv = lin(keys[2], D_MODEL, D_MODEL)
    wo, bo = lin(keys[3], D_MODEL, D_MODEL)
    wq2, bq2 = lin(keys[4], D_MODEL, D_MODEL)
    wk2, bk2 = lin(keys[5], D_MODEL, D_MODEL)
    wv2, bv2 = lin(keys[6], D_MODEL, D_MODEL)
    wo2, bo2 = lin(keys[7], D_MODEL, D_MODEL)
    w1, b1 = lin(keys[8], D_MODEL, D_FF)
    w2, b2 = lin(keys[9], D_FF, D_MODEL)
    ones = jnp.ones((D_MODEL,), jnp.float32)
    zeros = jnp.zeros((D_MODEL,), jnp.float32)
    return {
        "ln0_g": ones, "ln0_b": zeros,
        "ln1_g": ones, "ln1_b": zeros,
        "ln2_g": ones, "ln2_b": zeros,
        "self_attn": (wq, bq, wk, bk, wv, bv, wo, bo),
        "src_attn": (wq2, bq2, wk2, bk2, wv2, bv2, wo2, bo2),
        "ffn": (w1, b1, w2, b2),
    }


if __name__ == "__main__":
    B, T, S = 2, 8, 8
    key = jax.random.PRNGKey(0)
    kx, km = jax.random.split(key)
    x = jax.random.normal(kx, (B, T, D_MODEL), jnp.float32)
    memory = jax.random.normal(km, (B, S, D_MODEL), jnp.float32)
    tgt_mask = jnp.broadcast_to(jnp.tril(jnp.ones((T, T), jnp.float32)), (B, T, T))
    src_mask = jnp.ones((B, T, S), jnp.float32)

    params = init_params(jax.random.PRNGKey(42))
    fused = fuse_params(params)                 # weight fusion done ONCE
    fused = jax.tree_util.tree_map(jax.block_until_ready, fused)

    out = decoder_layer(x, memory, src_mask, tgt_mask, fused)
    out = jax.block_until_ready(out)

    ref = decoder_layer_ref(x, memory, src_mask, tgt_mask, params)
    assert out.shape == (B, T, D_MODEL)
    assert jnp.allclose(out, ref, atol=1e-4, rtol=1e-4), "Pallas output != reference"
    print("KERNEL_OK")
</pallas_src>

<mosaic_0001>
module attributes {stable_mosaic.version = 11 : i64} {
  func.func @_decoder_layer_kernel(%arg0: memref<16x32xf32, #tpu.memory_space<vmem>>, %arg1: memref<16x32xf32, #tpu.memory_space<vmem>>, %arg2: memref<2x8x8xf32, #tpu.memory_space<vmem>>, %arg3: memref<2x8x8xf32, #tpu.memory_space<vmem>>, %arg4: memref<3x1x32xf32, #tpu.memory_space<vmem>>, %arg5: memref<3x1x32xf32, #tpu.memory_space<vmem>>, %arg6: memref<32x96xf32, #tpu.memory_space<vmem>>, %arg7: memref<1x96xf32, #tpu.memory_space<vmem>>, %arg8: memref<32x32xf32, #tpu.memory_space<vmem>>, %arg9: memref<1x32xf32, #tpu.memory_space<vmem>>, %arg10: memref<32x32xf32, #tpu.memory_space<vmem>>, %arg11: memref<1x32xf32, #tpu.memory_space<vmem>>, %arg12: memref<32x64xf32, #tpu.memory_space<vmem>>, %arg13: memref<1x64xf32, #tpu.memory_space<vmem>>, %arg14: memref<32x32xf32, #tpu.memory_space<vmem>>, %arg15: memref<1x32xf32, #tpu.memory_space<vmem>>, %arg16: memref<32x64xf32, #tpu.memory_space<vmem>>, %arg17: memref<1x64xf32, #tpu.memory_space<vmem>>, %arg18: memref<64x32xf32, #tpu.memory_space<vmem>>, %arg19: memref<1x32xf32, #tpu.memory_space<vmem>>, %arg20: memref<16x32xf32, #tpu.memory_space<vmem>>) attributes {dimension_semantics = [], scalar_prefetch = 0 : i64, scratch_operands = 0 : i64, tpu.core_type = #tpu.core_type<tc>} {
    %c0 = arith.constant 0 : index
    %c0_0 = arith.constant 0 : index
    %0 = vector.load %arg0[%c0, %c0_0] : memref<16x32xf32, #tpu.memory_space<vmem>>, vector<16x32xf32>
    %c0_1 = arith.constant 0 : index
    %c0_2 = arith.constant 0 : index
    %1 = vector.load %arg1[%c0_1, %c0_2] : memref<16x32xf32, #tpu.memory_space<vmem>>, vector<16x32xf32>
    %c0_3 = arith.constant 0 : index
    %c0_4 = arith.constant 0 : index
    %c0_5 = arith.constant 0 : index
    %2 = vector.load %arg2[%c0_3, %c0_4, %c0_5] : memref<2x8x8xf32, #tpu.memory_space<vmem>>, vector<2x8x8xf32>
    %cst = arith.constant 0.000000e+00 : f32
    %3 = vector.broadcast %cst : f32 to vector<2x8x8xf32>
    %4 = arith.cmpf ogt, %2, %3 : vector<2x8x8xf32>
    %cst_6 = arith.constant 0.000000e+00 : f32
    %cst_7 = arith.constant -1.000000e+09 : f32
    %5 = vector.broadcast %cst_6 : f32 to vector<2x8x8xf32>
    %6 = vector.broadcast %cst_7 : f32 to vector<2x8x8xf32>
    %7 = arith.select %4, %5, %6 : vector<2x8x8xi1>, vector<2x8x8xf32>
    %c0_8 = arith.constant 0 : index
    %c0_9 = arith.constant 0 : index
    %c0_10 = arith.constant 0 : index
    %8 = vector.load %arg3[%c0_8, %c0_9, %c0_10] : memref<2x8x8xf32, #tpu.memory_space<vmem>>, vector<2x8x8xf32>
    %cst_11 = arith.constant 0.000000e+00 : f32
    %9 = vector.broadcast %cst_11 : f32 to vector<2x8x8xf32>
    %10 = arith.cmpf ogt, %8, %9 : vector<2x8x8xf32>
    %cst_12 = arith.constant 0.000000e+00 : f32
    %cst_13 = arith.constant -1.000000e+09 : f32
    %11 = vector.broadcast %cst_12 : f32 to vector<2x8x8xf32>
    %12 = vector.broadcast %cst_13 : f32 to vector<2x8x8xf32>
    %13 = arith.select %10, %11, %12 : vector<2x8x8xi1>, vector<2x8x8xf32>
    %c0_14 = arith.constant 0 : index
    %c0_15 = arith.constant 0 : index
    %c0_16 = arith.constant 0 : index
    %14 = vector.load %arg4[%c0_14, %c0_15, %c0_16] : memref<3x1x32xf32, #tpu.memory_space<vmem>>, vector<1x1x32xf32>
    %15 = vector.shape_cast %14 : vector<1x1x32xf32> to vector<1x32xf32>
    %c0_17 = arith.constant 0 : index
    %c0_18 = arith.constant 0 : index
    %c0_19 = arith.constant 0 : index
    %16 = vector.load %arg5[%c0_17, %c0_18, %c0_19] : memref<3x1x32xf32, #tpu.memory_space<vmem>>, vector<1x1x32xf32>
    %17 = vector.shape_cast %16 : vector<1x1x32xf32> to vector<1x32xf32>
    %cst_20 = arith.constant dense<0.000000e+00> : vector<16xf32>
    %18 = vector.multi_reduction <add>, %0, %cst_20 [1] : vector<16x32xf32> to vector<16xf32>
    %19 = vector.shape_cast %18 : vector<16xf32> to vector<16x1xf32>
    %cst_21 = arith.constant 3.200000e+01 : f32
    %20 = vector.broadcast %cst_21 : f32 to vector<16x1xf32>
    %21 = arith.divf %19, %20 : vector<16x1xf32>
    %22 = vector.broadcast %21 : vector<16x1xf32> to vector<16x32xf32>
    %23 = arith.subf %0, %22 : vector<16x32xf32>
    %24 = arith.mulf %23, %23 : vector<16x32xf32>
    %cst_22 = arith.constant dense<0.000000e+00> : vector<16xf32>
    %25 = vector.multi_reduction <add>, %24, %cst_22 [1] : vector<16x32xf32> to vector<16xf32>
    %26 = vector.shape_cast %25 : vector<16xf32> to vector<16x1xf32>
    %cst_23 = arith.constant 3.100000e+01 : f32
    %27 = vector.broadcast %cst_23 : f32 to vector<16x1xf32>
    %28 = arith.divf %26, %27 : vector<16x1xf32>
    %29 = vector.broadcast %21 : vector<16x1xf32> to vector<16x32xf32>
    %30 = arith.subf %0, %29 : vector<16x32xf32>
    %31 = vector.broadcast %15 : vector<1x32xf32> to vector<16x32xf32>
    %32 = arith.mulf %31, %30 : vector<16x32xf32>
    %33 = math.sqrt %28 : vector<16x1xf32>
    %cst_24 = arith.constant 9.99999997E-7 : f32
    %34 = vector.broadcast %cst_24 : f32 to vector<16x1xf32>
    %35 = arith.addf %33, %34 : vector<16x1xf32>
    %36 = vector.broadcast %35 : vector<16x1xf32> to vector<16x32xf32>
    %37 = arith.divf %32, %36 : vector<16x32xf32>
    %38 = vector.broadcast %17 : vector<1x32xf32> to vector<16x32xf32>
    %39 = arith.addf %37, %38 : vector<16x32xf32>
    %c0_25 = arith.constant 0 : index
    %c0_26 = arith.constant 0 : index
    %40 = vector.load %arg6[%c0_25, %c0_26] : memref<32x96xf32, #tpu.memory_space<vmem>>, vector<32x96xf32>
    %cst_27 = arith.constant dense<0.000000e+00> : vector<16x96xf32>
    %41 = tpu.matmul %39, %40, %cst_27 {dimension_numbers = #tpu.dot_dimension_numbers<[1], [0], [0], [1], [0, 0, 1, 1], [], []>} : vector<16x32xf32>, vector<32x96xf32>, vector<16x96xf32> -> vector<16x96xf32>
    %c0_28 = arith.constant 0 : index
    %c0_29 = arith.constant 0 : index
    %42 = vector.load %arg7[%c0_28, %c0_29] : memref<1x96xf32, #tpu.memory_space<vmem>>, vector<1x96xf32>
    %43 = vector.broadcast %42 : vector<1x96xf32> to vector<16x96xf32>
    %44 = arith.addf %41, %43 : vector<16x96xf32>
    %45 = vector.extract_strided_slice %44 {offsets = [0, 0], sizes = [16, 32], strides = [1, 1]} : vector<16x96xf32> to vector<16x32xf32>
    %46 = vector.extract_strided_slice %44 {offsets = [0, 32], sizes = [16, 32], strides = [1, 1]} : vector<16x96xf32> to vector<16x32xf32>
    %47 = vector.extract_strided_slice %44 {offsets = [0, 64], sizes = [16, 32], strides = [1, 1]} : vector<16x96xf32> to vector<16x32xf32>
    %48 = tpu.transpose %46, [1, 0] : vector<16x32xf32> -> vector<32x16xf32>
    %49 = vector.extract_strided_slice %45 {offsets = [0, 0], sizes = [8, 32], strides = [1, 1]} : vector<16x32xf32> to vector<8x32xf32>
    %50 = vector.extract_strided_slice %47 {offsets = [0, 0], sizes = [8, 32], strides = [1, 1]} : vector<16x32xf32> to vector<8x32xf32>
    %51 = vector.extract_strided_slice %7 {offsets = [0, 0, 0], sizes = [1, 8, 8], strides = [1, 1, 1]} : vector<2x8x8xf32> to vector<1x8x8xf32>
    %52 = vector.shape_cast %51 : vector<1x8x8xf32> to vector<8x8xf32>
    %53 = vector.extract_strided_slice %49 {offsets = [0, 0], sizes = [8, 8], strides = [1, 1]} : vector<8x32xf32> to vector<8x8xf32>
    %54 = vector.extract_strided_slice %48 {offsets = [0, 0], sizes = [8, 8], strides = [1, 1]} : vector<32x16xf32> to vector<8x8xf32>
    %cst_30 = arith.constant dense<0.000000e+00> : vector<8x8xf32>
    %55 = tpu.matmul %53, %54, %cst_30 {dimension_numbers = #tpu.dot_dimension_numbers<[1], [0], [0], [1], [0, 0, 1, 1], [], []>} : vector<8x8xf32>, vector<8x8xf32>, vector<8x8xf32> -> vector<8x8xf32>
    %cst_31 = arith.constant 0.353553385 : f32
    %56 = vector.broadcast %cst_31 : f32 to vector<8x8xf32>
    %57 = arith.mulf %55, %56 : vector<8x8xf32>
    %58 = arith.addf %57, %52 : vector<8x8xf32>
    %cst_32 = arith.constant dense<0xFF800000> : vector<8xf32>
    %59 = vector.multi_reduction <maximumf>, %58, %cst_32 [1] : vector<8x8xf32> to vector<8xf32>
    %60 = vector.shape_cast %59 : vector<8xf32> to vector<8x1xf32>
    %61 = vector.broadcast %60 : vector<8x1xf32> to vector<8x8xf32>
    %62 = arith.subf %58, %61 : vector<8x8xf32>
    %63 = math.exp %62 : vector<8x8xf32>
    %cst_33 = arith.constant dense<0.000000e+00> : vector<8xf32>
    %64 = vector.multi_reduction <add>, %63, %cst_33 [1] : vector<8x8xf32> to vector<8xf32>
    %65 = vector.shape_cast %64 : vector<8xf32> to vector<8x1xf32>
    %66 = vector.broadcast %65 : vector<8x1xf32> to vector<8x8xf32>
    %67 = arith.divf %63, %66 : vector<8x8xf32>
    %68 = vector.extract_strided_slice %50 {offsets = [0, 0], sizes = [8, 8], strides = [1, 1]} : vector<8x32xf32> to vector<8x8xf32>
    %cst_34 = arith.constant dense<0.000000e+00> : vector<8x8xf32>
    %69 = tpu.matmul %67, %68, %cst_34 {dimension_numbers = #tpu.dot_dimension_numbers<[1], [0], [0], [1], [0, 0, 1, 1], [], []>} : vector<8x8xf32>, vector<8x8xf32>, vector<8x8xf32> -> vector<8x8xf32>
    %70 = vector.extract_strided_slice %49 {offsets = [0, 8], sizes = [8, 8], strides = [1, 1]} : vector<8x32xf32> to vector<8x8xf32>
    %71 = vector.extract_strided_slice %48 {offsets = [8, 0], sizes = [8, 8], strides = [1, 1]} : vector<32x16xf32> to vector<8x8xf32>
    %cst_35 = arith.constant dense<0.000000e+00> : vector<8x8xf32>
    %72 = tpu.matmul %70, %71, %cst_35 {dimension_numbers = #tpu.dot_dimension_numbers<[1], [0], [0], [1], [0, 0, 1, 1], [], []>} : vector<8x8xf32>, vector<8x8xf32>, vector<8x8xf32> -> vector<8x8xf32>
    %cst_36 = arith.constant 0.353553385 : f32
    %73 = vector.broadcast %cst_36 : f32 to vector<8x8xf32>
    %74 = arith.mulf %72, %73 : vector<8x8xf32>
    %75 = arith.addf %74, %52 : vector<8x8xf32>
    %cst_37 = arith.constant dense<0xFF800000> : vector<8xf32>
    %76 = vector.multi_reduction <maximumf>, %75, %cst_37 [1] : vector<8x8xf32> to vector<8xf32>
    %77 = vector.shape_cast %76 : vector<8xf32> to vector<8x1xf32>
    %78 = vector.broadcast %77 : vector<8x1xf32> to vector<8x8xf32>
    %79 = arith.subf %75, %78 : vector<8x8xf32>
    %80 = math.exp %79 : vector<8x8xf32>
    %cst_38 = arith.constant dense<0.000000e+00> : vector<8xf32>
    %81 = vector.multi_reduction <add>, %80, %cst_38 [1] : vector<8x8xf32> to vector<8xf32>
    %82 = vector.shape_cast %81 : vector<8xf32> to vector<8x1xf32>
    %83 = vector.broadcast %82 : vector<8x1xf32> to vector<8x8xf32>
    %84 = arith.divf %80, %83 : vector<8x8xf32>
    %85 = vector.extract_strided_slice %50 {offsets = [0, 8], sizes = [8, 8], strides = [1, 1]} : vector<8x32xf32> to vector<8x8xf32>
    %cst_39 = arith.constant dense<0.000000e+00> : vector<8x8xf32>
    %86 = tpu.matmul %84, %85, %cst_39 {dimension_numbers = #tpu.dot_dimension_numbers<[1], [0], [0], [1], [0, 0, 1, 1], [], []>} : vector<8x8xf32>, vector<8x8xf32>, vector<8x8xf32> -> vector<8x8xf32>
    %87 = vector.extract_strided_slice %49 {offsets = [0, 16], sizes = [8, 8], strides = [1, 1]} : vector<8x32xf32> to vector<8x8xf32>
    %88 = vector.extract_strided_slice %48 {offsets = [16, 0], sizes = [8, 8], strides = [1, 1]} : vector<32x16xf32> to vector<8x8xf32>
    %cst_40 = arith.constant dense<0.000000e+00> : vector<8x8xf32>
    %89 = tpu.matmul %87, %88, %cst_40 {dimension_numbers = #tpu.dot_dimension_numbers<[1], [0], [0], [1], [0, 0, 1, 1], [], []>} : vector<8x8xf32>, vector<8x8xf32>, vector<8x8xf32> -> vector<8x8xf32>
    %cst_41 = arith.constant 0.353553385 : f32
    %90 = vector.broadcast %cst_41 : f32 to vector<8x8xf32>
    %91 = arith.mulf %89, %90 : vector<8x8xf32>
    %92 = arith.addf %91, %52 : vector<8x8xf32>
    %cst_42 = arith.constant dense<0xFF800000> : vector<8xf32>
    %93 = vector.multi_reduction <maximumf>, %92, %cst_42 [1] : vector<8x8xf32> to vector<8xf32>
    %94 = vector.shape_cast %93 : vector<8xf32> to vector<8x1xf32>
    %95 = vector.broadcast %94 : vector<8x1xf32> to vector<8x8xf32>
    %96 = arith.subf %92, %95 : vector<8x8xf32>
    %97 = math.exp %96 : vector<8x8xf32>
    %cst_43 = arith.constant dense<0.000000e+00> : vector<8xf32>
    %98 = vector.multi_reduction <add>, %97, %cst_43 [1] : vector<8x8xf32> to vector<8xf32>
    %99 = vector.shape_cast %98 : vector<8xf32> to vector<8x1xf32>
    %100 = vector.broadcast %99 : vector<8x1xf32> to vector<8x8xf32>
    %101 = arith.divf %97, %100 : vector<8x8xf32>
    %102 = vector.extract_strided_slice %50 {offsets = [0, 16], sizes = [8, 8], strides = [1, 1]} : vector<8x32xf32> to vector<8x8xf32>
    %cst_44 = arith.constant dense<0.000000e+00> : vector<8x8xf32>
    %103 = tpu.matmul %101, %102, %cst_44 {dimension_numbers = #tpu.dot_dimension_numbers<[1], [0], [0], [1], [0, 0, 1, 1], [], []>} : vector<8x8xf32>, vector<8x8xf32>, vector<8x8xf32> -> vector<8x8xf32>
    %104 = vector.extract_strided_slice %49 {offsets = [0, 24], sizes = [8, 8], strides = [1, 1]} : vector<8x32xf32> to vector<8x8xf32>
    %105 = vector.extract_strided_slice %48 {offsets = [24, 0], sizes = [8, 8], strides = [1, 1]} : vector<32x16xf32> to vector<8x8xf32>
    %cst_45 = arith.constant dense<0.000000e+00> : vector<8x8xf32>
    %106 = tpu.matmul %104, %105, %cst_45 {dimension_numbers = #tpu.dot_dimension_numbers<[1], [0], [0], [1], [0, 0, 1, 1], [], []>} : vector<8x8xf32>, vector<8x8xf32>, vector<8x8xf32> -> vector<8x8xf32>
    %cst_46 = arith.constant 0.353553385 : f32
    %107 = vector.broadcast %cst_46 : f32 to vector<8x8xf32>
    %108 = arith.mulf %106, %107 : vector<8x8xf32>
    %109 = arith.addf %108, %52 : vector<8x8xf32>
    %cst_47 = arith.constant dense<0xFF800000> : vector<8xf32>
    %110 = vector.multi_reduction <maximumf>, %109, %cst_47 [1] : vector<8x8xf32> to vector<8xf32>
    %111 = vector.shape_cast %110 : vector<8xf32> to vector<8x1xf32>
    %112 = vector.broadcast %111 : vector<8x1xf32> to vector<8x8xf32>
    %113 = arith.subf %109, %112 : vector<8x8xf32>
    %114 = math.exp %113 : vector<8x8xf32>
    %cst_48 = arith.constant dense<0.000000e+00> : vector<8xf32>
    %115 = vector.multi_reduction <add>, %114, %cst_48 [1] : vector<8x8xf32> to vector<8xf32>
    %116 = vector.shape_cast %115 : vector<8xf32> to vector<8x1xf32>
    %117 = vector.broadcast %116 : vector<8x1xf32> to vector<8x8xf32>
    %118 = arith.divf %114, %117 : vector<8x8xf32>
    %119 = vector.extract_strided_slice %50 {offsets = [0, 24], sizes = [8, 8], strides = [1, 1]} : vector<8x32xf32> to vector<8x8xf32>
    %cst_49 = arith.constant dense<0.000000e+00> : vector<8x8xf32>
    %120 = tpu.matmul %118, %119, %cst_49 {dimension_numbers = #tpu.dot_dimension_numbers<[1], [0], [0], [1], [0, 0, 1, 1], [], []>} : vector<8x8xf32>, vector<8x8xf32>, vector<8x8xf32> -> vector<8x8xf32>
    %121 = tpu.concatenate %69, %86, %103, %120 in 1 : vector<8x8xf32>, vector<8x8xf32>, vector<8x8xf32>, vector<8x8xf32> -> vector<8x32xf32>
    %122 = vector.extract_strided_slice %45 {offsets = [8, 0], sizes = [8, 32], strides = [1, 1]} : vector<16x32xf32> to vector<8x32xf32>
    %123 = vector.extract_strided_slice %47 {offsets = [8, 0], sizes = [8, 32], strides = [1, 1]} : vector<16x32xf32> to vector<8x32xf32>
    %124 = vector.extract_strided_slice %7 {offsets = [1, 0, 0], sizes = [1, 8, 8], strides = [1, 1, 1]} : vector<2x8x8xf32> to vector<1x8x8xf32>
    %125 = vector.shape_cast %124 : vector<1x8x8xf32> to vector<8x8xf32>
    %126 = vector.extract_strided_slice %122 {offsets = [0, 0], sizes = [8, 8], strides = [1, 1]} : vector<8x32xf32> to vector<8x8xf32>
    %127 = vector.extract_strided_slice %48 {offsets = [0, 8], sizes = [8, 8], strides = [1, 1]} : vector<32x16xf32> to vector<8x8xf32>
    %cst_50 = arith.constant dense<0.000000e+00> : vector<8x8xf32>
    %128 = tpu.matmul %126, %127, %cst_50 {dimension_numbers = #tpu.dot_dimension_numbers<[1], [0], [0], [1], [0, 0, 1, 1], [], []>} : vector<8x8xf32>, vector<8x8xf32>, vector<8x8xf32> -> vector<8x8xf32>
    %cst_51 = arith.constant 0.353553385 : f32
    %129 = vector.broadcast %cst_51 : f32 to vector<8x8xf32>
    %130 = arith.mulf %128, %129 : vector<8x8xf32>
    %131 = arith.addf %130, %125 : vector<8x8xf32>
    %cst_52 = arith.constant dense<0xFF800000> : vector<8xf32>
    %132 = vector.multi_reduction <maximumf>, %131, %cst_52 [1] : vector<8x8xf32> to vector<8xf32>
    %133 = vector.shape_cast %132 : vector<8xf32> to vector<8x1xf32>
    %134 = vector.broadcast %133 : vector<8x1xf32> to vector<8x8xf32>
    %135 = arith.subf %131, %134 : vector<8x8xf32>
    %136 = math.exp %135 : vector<8x8xf32>
    %cst_53 = arith.constant dense<0.000000e+00> : vector<8xf32>
    %137 = vector.multi_reduction <add>, %136, %cst_53 [1] : vector<8x8xf32> to vector<8xf32>
    %138 = vector.shape_cast %137 : vector<8xf32> to vector<8x1xf32>
    %139 = vector.broadcast %138 : vector<8x1xf32> to vector<8x8xf32>
    %140 = arith.divf %136, %139 : vector<8x8xf32>
    %141 = vector.extract_strided_slice %123 {offsets = [0, 0], sizes = [8, 8], strides = [1, 1]} : vector<8x32xf32> to vector<8x8xf32>
    %cst_54 = arith.constant dense<0.000000e+00> : vector<8x8xf32>
    %142 = tpu.matmul %140, %141, %cst_54 {dimension_numbers = #tpu.dot_dimension_numbers<[1], [0], [0], [1], [0, 0, 1, 1], [], []>} : vector<8x8xf32>, vector<8x8xf32>, vector<8x8xf32> -> vector<8x8xf32>
    %143 = vector.extract_strided_slice %122 {offsets = [0, 8], sizes = [8, 8], strides = [1, 1]} : vector<8x32xf32> to vector<8x8xf32>
    %144 = vector.extract_strided_slice %48 {offsets = [8, 8], sizes = [8, 8], strides = [1, 1]} : vector<32x16xf32> to vector<8x8xf32>
    %cst_55 = arith.constant dense<0.000000e+00> : vector<8x8xf32>
    %145 = tpu.matmul %143, %144, %cst_55 {dimension_numbers = #tpu.dot_dimension_numbers<[1], [0], [0], [1], [0, 0, 1, 1], [], []>} : vector<8x8xf32>, vector<8x8xf32>, vector<8x8xf32> -> vector<8x8xf32>
    %cst_56 = arith.constant 0.353553385 : f32
    %146 = vector.broadcast %cst_56 : f32 to vector<8x8xf32>
    %147 = arith.mulf %145, %146 : vector<8x8xf32>
    %148 = arith.addf %147, %125 : vector<8x8xf32>
    %cst_57 = arith.constant dense<0xFF800000> : vector<8xf32>
    %149 = vector.multi_reduction <maximumf>, %148, %cst_57 [1] : vector<8x8xf32> to vector<8xf32>
    %150 = vector.shape_cast %149 : vector<8xf32> to vector<8x1xf32>
    %151 = vector.broadcast %150 : vector<8x1xf32> to vector<8x8xf32>
    %152 = arith.subf %148, %151 : vector<8x8xf32>
    %153 = math.exp %152 : vector<8x8xf32>
    %cst_58 = arith.constant dense<0.000000e+00> : vector<8xf32>
    %154 = vector.multi_reduction <add>, %153, %cst_58 [1] : vector<8x8xf32> to vector<8xf32>
    %155 = vector.shape_cast %154 : vector<8xf32> to vector<8x1xf32>
    %156 = vector.broadcast %155 : vector<8x1xf32> to vector<8x8xf32>
    %157 = arith.divf %153, %156 : vector<8x8xf32>
    %158 = vector.extract_strided_slice %123 {offsets = [0, 8], sizes = [8, 8], strides = [1, 1]} : vector<8x32xf32> to vector<8x8xf32>
    %cst_59 = arith.constant dense<0.000000e+00> : vector<8x8xf32>
    %159 = tpu.matmul %157, %158, %cst_59 {dimension_numbers = #tpu.dot_dimension_numbers<[1], [0], [0], [1], [0, 0, 1, 1], [], []>} : vector<8x8xf32>, vector<8x8xf32>, vector<8x8xf32> -> vector<8x8xf32>
    %160 = vector.extract_strided_slice %122 {offsets = [0, 16], sizes = [8, 8], strides = [1, 1]} : vector<8x32xf32> to vector<8x8xf32>
    %161 = vector.extract_strided_slice %48 {offsets = [16, 8], sizes = [8, 8], strides = [1, 1]} : vector<32x16xf32> to vector<8x8xf32>
    %cst_60 = arith.constant dense<0.000000e+00> : vector<8x8xf32>
    %162 = tpu.matmul %160, %161, %cst_60 {dimension_numbers = #tpu.dot_dimension_numbers<[1], [0], [0], [1], [0, 0, 1, 1], [], []>} : vector<8x8xf32>, vector<8x8xf32>, vector<8x8xf32> -> vector<8x8xf32>
    %cst_61 = arith.constant 0.353553385 : f32
    %163 = vector.broadcast %cst_61 : f32 to vector<8x8xf32>
    %164 = arith.mulf %162, %163 : vector<8x8xf32>
    %165 = arith.addf %164, %125 : vector<8x8xf32>
    %cst_62 = arith.constant dense<0xFF800000> : vector<8xf32>
    %166 = vector.multi_reduction <maximumf>, %165, %cst_62 [1] : vector<8x8xf32> to vector<8xf32>
    %167 = vector.shape_cast %166 : vector<8xf32> to vector<8x1xf32>
    %168 = vector.broadcast %167 : vector<8x1xf32> to vector<8x8xf32>
    %169 = arith.subf %165, %168 : vector<8x8xf32>
    %170 = math.exp %169 : vector<8x8xf32>
    %cst_63 = arith.constant dense<0.000000e+00> : vector<8xf32>
    %171 = vector.multi_reduction <add>, %170, %cst_63 [1] : vector<8x8xf32> to vector<8xf32>
    %172 = vector.shape_cast %171 : vector<8xf32> to vector<8x1xf32>
    %173 = vector.broadcast %172 : vector<8x1xf32> to vector<8x8xf32>
    %174 = arith.divf %170, %173 : vector<8x8xf32>
    %175 = vector.extract_strided_slice %123 {offsets = [0, 16], sizes = [8, 8], strides = [1, 1]} : vector<8x32xf32> to vector<8x8xf32>
    %cst_64 = arith.constant dense<0.000000e+00> : vector<8x8xf32>
    %176 = tpu.matmul %174, %175, %cst_64 {dimension_numbers = #tpu.dot_dimension_numbers<[1], [0], [0], [1], [0, 0, 1, 1], [], []>} : vector<8x8xf32>, vector<8x8xf32>, vector<8x8xf32> -> vector<8x8xf32>
    %177 = vector.extract_strided_slice %122 {offsets = [0, 24], sizes = [8, 8], strides = [1, 1]} : vector<8x32xf32> to vector<8x8xf32>
    %178 = vector.extract_strided_slice %48 {offsets = [24, 8], sizes = [8, 8], strides = [1, 1]} : vector<32x16xf32> to vector<8x8xf32>
    %cst_65 = arith.constant dense<0.000000e+00> : vector<8x8xf32>
    %179 = tpu.matmul %177, %178, %cst_65 {dimension_numbers = #tpu.dot_dimension_numbers<[1], [0], [0], [1], [0, 0, 1, 1], [], []>} : vector<8x8xf32>, vector<8x8xf32>, vector<8x8xf32> -> vector<8x8xf32>
    %cst_66 = arith.constant 0.353553385 : f32
    %180 = vector.broadcast %cst_66 : f32 to vector<8x8xf32>
    %181 = arith.mulf %179, %180 : vector<8x8xf32>
    %182 = arith.addf %181, %125 : vector<8x8xf32>
    %cst_67 = arith.constant dense<0xFF800000> : vector<8xf32>
    %183 = vector.multi_reduction <maximumf>, %182, %cst_67 [1] : vector<8x8xf32> to vector<8xf32>
    %184 = vector.shape_cast %183 : vector<8xf32> to vector<8x1xf32>
    %185 = vector.broadcast %184 : vector<8x1xf32> to vector<8x8xf32>
    %186 = arith.subf %182, %185 : vector<8x8xf32>
    %187 = math.exp %186 : vector<8x8xf32>
    %cst_68 = arith.constant dense<0.000000e+00> : vector<8xf32>
    %188 = vector.multi_reduction <add>, %187, %cst_68 [1] : vector<8x8xf32> to vector<8xf32>
    %189 = vector.shape_cast %188 : vector<8xf32> to vector<8x1xf32>
    %190 = vector.broadcast %189 : vector<8x1xf32> to vector<8x8xf32>
    %191 = arith.divf %187, %190 : vector<8x8xf32>
    %192 = vector.extract_strided_slice %123 {offsets = [0, 24], sizes = [8, 8], strides = [1, 1]} : vector<8x32xf32> to vector<8x8xf32>
    %cst_69 = arith.constant dense<0.000000e+00> : vector<8x8xf32>
    %193 = tpu.matmul %191, %192, %cst_69 {dimension_numbers = #tpu.dot_dimension_numbers<[1], [0], [0], [1], [0, 0, 1, 1], [], []>} : vector<8x8xf32>, vector<8x8xf32>, vector<8x8xf32> -> vector<8x8xf32>
    %194 = tpu.concatenate %142, %159, %176, %193 in 1 : vector<8x8xf32>, vector<8x8xf32>, vector<8x8xf32>, vector<8x8xf32> -> vector<8x32xf32>
    %195 = tpu.concatenate %121, %194 in 0 : vector<8x32xf32>, vector<8x32xf32> -> vector<16x32xf32>
    %c0_70 = arith.constant 0 : index
    %c0_71 = arith.constant 0 : index
    %196 = vector.load %arg8[%c0_70, %c0_71] : memref<32x32xf32, #tpu.memory_space<vmem>>, vector<32x32xf32>
    %cst_72 = arith.constant dense<0.000000e+00> : vector<16x32xf32>
    %197 = tpu.matmul %195, %196, %cst_72 {dimension_numbers = #tpu.dot_dimension_numbers<[1], [0], [0], [1], [0, 0, 1, 1], [], []>} : vector<16x32xf32>, vector<32x32xf32>, vector<16x32xf32> -> vector<16x32xf32>
    %c0_73 = arith.constant 0 : index
    %c0_74 = arith.constant 0 : index
    %198 = vector.load %arg9[%c0_73, %c0_74] : memref<1x32xf32, #tpu.memory_space<vmem>>, vector<1x32xf32>
    %199 = vector.broadcast %198 : vector<1x32xf32> to vector<16x32xf32>
    %200 = arith.addf %197, %199 : vector<16x32xf32>
    %201 = arith.addf %0, %200 : vector<16x32xf32>
    %c1 = arith.constant 1 : index
    %c0_75 = arith.constant 0 : index
    %c0_76 = arith.constant 0 : index
    %202 = vector.load %arg4[%c1, %c0_75, %c0_76] : memref<3x1x32xf32, #tpu.memory_space<vmem>>, vector<1x1x32xf32>
    %203 = vector.shape_cast %202 : vector<1x1x32xf32> to vector<1x32xf32>
    %c1_77 = arith.constant 1 : index
    %c0_78 = arith.constant 0 : index
    %c0_79 = arith.constant 0 : index
    %204 = vector.load %arg5[%c1_77, %c0_78, %c0_79] : memref<3x1x32xf32, #tpu.memory_space<vmem>>, vector<1x1x32xf32>
    %205 = vector.shape_cast %204 : vector<1x1x32xf32> to vector<1x32xf32>
    %cst_80 = arith.constant dense<0.000000e+00> : vector<16xf32>
    %206 = vector.multi_reduction <add>, %201, %cst_80 [1] : vector<16x32xf32> to vector<16xf32>
    %207 = vector.shape_cast %206 : vector<16xf32> to vector<16x1xf32>
    %cst_81 = arith.constant 3.200000e+01 : f32
    %208 = vector.broadcast %cst_81 : f32 to vector<16x1xf32>
    %209 = arith.divf %207, %208 : vector<16x1xf32>
    %210 = vector.broadcast %209 : vector<16x1xf32> to vector<16x32xf32>
    %211 = arith.subf %201, %210 : vector<16x32xf32>
    %212 = arith.mulf %211, %211 : vector<16x32xf32>
    %cst_82 = arith.constant dense<0.000000e+00> : vector<16xf32>
    %213 = vector.multi_reduction <add>, %212, %cst_82 [1] : vector<16x32xf32> to vector<16xf32>
    %214 = vector.shape_cast %213 : vector<16xf32> to vector<16x1xf32>
    %cst_83 = arith.constant 3.100000e+01 : f32
    %215 = vector.broadcast %cst_83 : f32 to vector<16x1xf32>
    %216 = arith.divf %214, %215 : vector<16x1xf32>
    %217 = vector.broadcast %209 : vector<16x1xf32> to vector<16x32xf32>
    %218 = arith.subf %201, %217 : vector<16x32xf32>
    %219 = vector.broadcast %203 : vector<1x32xf32> to vector<16x32xf32>
    %220 = arith.mulf %219, %218 : vector<16x32xf32>
    %221 = math.sqrt %216 : vector<16x1xf32>
    %cst_84 = arith.constant 9.99999997E-7 : f32
    %222 = vector.broadcast %cst_84 : f32 to vector<16x1xf32>
    %223 = arith.addf %221, %222 : vector<16x1xf32>
    %224 = vector.broadcast %223 : vector<16x1xf32> to vector<16x32xf32>
    %225 = arith.divf %220, %224 : vector<16x32xf32>
    %226 = vector.broadcast %205 : vector<1x32xf32> to vector<16x32xf32>
    %227 = arith.addf %225, %226 : vector<16x32xf32>
    %c0_85 = arith.constant 0 : index
    %c0_86 = arith.constant 0 : index
    %228 = vector.load %arg10[%c0_85, %c0_86] : memref<32x32xf32, #tpu.memory_space<vmem>>, vector<32x32xf32>
    %cst_87 = arith.constant dense<0.000000e+00> : vector<16x32xf32>
    %229 = tpu.matmul %227, %228, %cst_87 {dimension_numbers = #tpu.dot_dimension_numbers<[1], [0], [0], [1], [0, 0, 1, 1], [], []>} : vector<16x32xf32>, vector<32x32xf32>, vector<16x32xf32> -> vector<16x32xf32>
    %c0_88 = arith.constant 0 : index
    %c0_89 = arith.constant 0 : index
    %230 = vector.load %arg11[%c0_88, %c0_89] : memref<1x32xf32, #tpu.memory_space<vmem>>, vector<1x32xf32>
    %231 = vector.broadcast %230 : vector<1x32xf32> to vector<16x32xf32>
    %232 = arith.addf %229, %231 : vector<16x32xf32>
    %c0_90 = arith.constant 0 : index
    %c0_91 = arith.constant 0 : index
    %233 = vector.load %arg12[%c0_90, %c0_91] : memref<32x64xf32, #tpu.memory_space<vmem>>, vector<32x64xf32>
    %cst_92 = arith.constant dense<0.000000e+00> : vector<16x64xf32>
    %234 = tpu.matmul %1, %233, %cst_92 {dimension_numbers = #tpu.dot_dimension_numbers<[1], [0], [0], [1], [0, 0, 1, 1], [], []>} : vector<16x32xf32>, vector<32x64xf32>, vector<16x64xf32> -> vector<16x64xf32>
    %c0_93 = arith.constant 0 : index
    %c0_94 = arith.constant 0 : index
    %235 = vector.load %arg13[%c0_93, %c0_94] : memref<1x64xf32, #tpu.memory_space<vmem>>, vector<1x64xf32>
    %236 = vector.broadcast %235 : vector<1x64xf32> to vector<16x64xf32>
    %237 = arith.addf %234, %236 : vector<16x64xf32>
    %238 = vector.extract_strided_slice %237 {offsets = [0, 0], sizes = [16, 32], strides = [1, 1]} : vector<16x64xf32> to vector<16x32xf32>
    %239 = vector.extract_strided_slice %237 {offsets = [0, 32], sizes = [16, 32], strides = [1, 1]} : vector<16x64xf32> to vector<16x32xf32>
    %240 = tpu.transpose %238, [1, 0] : vector<16x32xf32> -> vector<32x16xf32>
    %241 = vector.extract_strided_slice %232 {offsets = [0, 0], sizes = [8, 32], strides = [1, 1]} : vector<16x32xf32> to vector<8x32xf32>
    %242 = vector.extract_strided_slice %239 {offsets = [0, 0], sizes = [8, 32], strides = [1, 1]} : vector<16x32xf32> to vector<8x32xf32>
    %243 = vector.extract_strided_slice %13 {offsets = [0, 0, 0], sizes = [1, 8, 8], strides = [1, 1, 1]} : vector<2x8x8xf32> to vector<1x8x8xf32>
    %244 = vector.shape_cast %243 : vector<1x8x8xf32> to vector<8x8xf32>
    %245 = vector.extract_strided_slice %241 {offsets = [0, 0], sizes = [8, 8], strides = [1, 1]} : vector<8x32xf32> to vector<8x8xf32>
    %246 = vector.extract_strided_slice %240 {offsets = [0, 0], sizes = [8, 8], strides = [1, 1]} : vector<32x16xf32> to vector<8x8xf32>
    %cst_95 = arith.constant dense<0.000000e+00> : vector<8x8xf32>
    %247 = tpu.matmul %245, %246, %cst_95 {dimension_numbers = #tpu.dot_dimension_numbers<[1], [0], [0], [1], [0, 0, 1, 1], [], []>} : vector<8x8xf32>, vector<8x8xf32>, vector<8x8xf32> -> vector<8x8xf32>
    %cst_96 = arith.constant 0.353553385 : f32
    %248 = vector.broadcast %cst_96 : f32 to vector<8x8xf32>
    %249 = arith.mulf %247, %248 : vector<8x8xf32>
    %250 = arith.addf %249, %244 : vector<8x8xf32>
    %cst_97 = arith.constant dense<0xFF800000> : vector<8xf32>
    %251 = vector.multi_reduction <maximumf>, %250, %cst_97 [1] : vector<8x8xf32> to vector<8xf32>
    %252 = vector.shape_cast %251 : vector<8xf32> to vector<8x1xf32>
    %253 = vector.broadcast %252 : vector<8x1xf32> to vector<8x8xf32>
    %254 = arith.subf %250, %253 : vector<8x8xf32>
    %255 = math.exp %254 : vector<8x8xf32>
    %cst_98 = arith.constant dense<0.000000e+00> : vector<8xf32>
    %256 = vector.multi_reduction <add>, %255, %cst_98 [1] : vector<8x8xf32> to vector<8xf32>
    %257 = vector.shape_cast %256 : vector<8xf32> to vector<8x1xf32>
    %258 = vector.broadcast %257 : vector<8x1xf32> to vector<8x8xf32>
    %259 = arith.divf %255, %258 : vector<8x8xf32>
    %260 = vector.extract_strided_slice %242 {offsets = [0, 0], sizes = [8, 8], strides = [1, 1]} : vector<8x32xf32> to vector<8x8xf32>
    %cst_99 = arith.constant dense<0.000000e+00> : vector<8x8xf32>
    %261 = tpu.matmul %259, %260, %cst_99 {dimension_numbers = #tpu.dot_dimension_numbers<[1], [0], [0], [1], [0, 0, 1, 1], [], []>} : vector<8x8xf32>, vector<8x8xf32>, vector<8x8xf32> -> vector<8x8xf32>
    %262 = vector.extract_strided_slice %241 {offsets = [0, 8], sizes = [8, 8], strides = [1, 1]} : vector<8x32xf32> to vector<8x8xf32>
    %263 = vector.extract_strided_slice %240 {offsets = [8, 0], sizes = [8, 8], strides = [1, 1]} : vector<32x16xf32> to vector<8x8xf32>
    %cst_100 = arith.constant dense<0.000000e+00> : vector<8x8xf32>
    %264 = tpu.matmul %262, %263, %cst_100 {dimension_numbers = #tpu.dot_dimension_numbers<[1], [0], [0], [1], [0, 0, 1, 1], [], []>} : vector<8x8xf32>, vector<8x8xf32>, vector<8x8xf32> -> vector<8x8xf32>
    %cst_101 = arith.constant 0.353553385 : f32
    %265 = vector.broadcast %cst_101 : f32 to vector<8x8xf32>
    %266 = arith.mulf %264, %265 : vector<8x8xf32>
    %267 = arith.addf %266, %244 : vector<8x8xf32>
    %cst_102 = arith.constant dense<0xFF800000> : vector<8xf32>
    %268 = vector.multi_reduction <maximumf>, %267, %cst_102 [1] : vector<8x8xf32> to vector<8xf32>
    %269 = vector.shape_cast %268 : vector<8xf32> to vector<8x1xf32>
    %270 = vector.broadcast %269 : vector<8x1xf32> to vector<8x8xf32>
    %271 = arith.subf %267, %270 : vector<8x8xf32>
    %272 = math.exp %271 : vector<8x8xf32>
    %cst_103 = arith.constant dense<0.000000e+00> : vector<8xf32>
    %273 = vector.multi_reduction <add>, %272, %cst_103 [1] : vector<8x8xf32> to vector<8xf32>
    %274 = vector.shape_cast %273 : vector<8xf32> to vector<8x1xf32>
    %275 = vector.broadcast %274 : vector<8x1xf32> to vector<8x8xf32>
    %276 = arith.divf %272, %275 : vector<8x8xf32>
    %277 = vector.extract_strided_slice %242 {offsets = [0, 8], sizes = [8, 8], strides = [1, 1]} : vector<8x32xf32> to vector<8x8xf32>
    %cst_104 = arith.constant dense<0.000000e+00> : vector<8x8xf32>
    %278 = tpu.matmul %276, %277, %cst_104 {dimension_numbers = #tpu.dot_dimension_numbers<[1], [0], [0], [1], [0, 0, 1, 1], [], []>} : vector<8x8xf32>, vector<8x8xf32>, vector<8x8xf32> -> vector<8x8xf32>
    %279 = vector.extract_strided_slice %241 {offsets = [0, 16], sizes = [8, 8], strides = [1, 1]} : vector<8x32xf32> to vector<8x8xf32>
    %280 = vector.extract_strided_slice %240 {offsets = [16, 0], sizes = [8, 8], strides = [1, 1]} : vector<32x16xf32> to vector<8x8xf32>
    %cst_105 = arith.constant dense<0.000000e+00> : vector<8x8xf32>
    %281 = tpu.matmul %279, %280, %cst_105 {dimension_numbers = #tpu.dot_dimension_numbers<[1], [0], [0], [1], [0, 0, 1, 1], [], []>} : vector<8x8xf32>, vector<8x8xf32>, vector<8x8xf32> -> vector<8x8xf32>
    %cst_106 = arith.constant 0.353553385 : f32
    %282 = vector.broadcast %cst_106 : f32 to vector<8x8xf32>
    %283 = arith.mulf %281, %282 : vector<8x8xf32>
    %284 = arith.addf %283, %244 : vector<8x8xf32>
    %cst_107 = arith.constant dense<0xFF800000> : vector<8xf32>
    %285 = vector.multi_reduction <maximumf>, %284, %cst_107 [1] : vector<8x8xf32> to vector<8xf32>
    %286 = vector.shape_cast %285 : vector<8xf32> to vector<8x1xf32>
    %287 = vector.broadcast %286 : vector<8x1xf32> to vector<8x8xf32>
    %288 = arith.subf %284, %287 : vector<8x8xf32>
    %289 = math.exp %288 : vector<8x8xf32>
    %cst_108 = arith.constant dense<0.000000e+00> : vector<8xf32>
    %290 = vector.multi_reduction <add>, %289, %cst_108 [1] : vector<8x8xf32> to vector<8xf32>
    %291 = vector.shape_cast %290 : vector<8xf32> to vector<8x1xf32>
    %292 = vector.broadcast %291 : vector<8x1xf32> to vector<8x8xf32>
    %293 = arith.divf %289, %292 : vector<8x8xf32>
    %294 = vector.extract_strided_slice %242 {offsets = [0, 16], sizes = [8, 8], strides = [1, 1]} : vector<8x32xf32> to vector<8x8xf32>
    %cst_109 = arith.constant dense<0.000000e+00> : vector<8x8xf32>
    %295 = tpu.matmul %293, %294, %cst_109 {dimension_numbers = #tpu.dot_dimension_numbers<[1], [0], [0], [1], [0, 0, 1, 1], [], []>} : vector<8x8xf32>, vector<8x8xf32>, vector<8x8xf32> -> vector<8x8xf32>
    %296 = vector.extract_strided_slice %241 {offsets = [0, 24], sizes = [8, 8], strides = [1, 1]} : vector<8x32xf32> to vector<8x8xf32>
    %297 = vector.extract_strided_slice %240 {offsets = [24, 0], sizes = [8, 8], strides = [1, 1]} : vector<32x16xf32> to vector<8x8xf32>
    %cst_110 = arith.constant dense<0.000000e+00> : vector<8x8xf32>
    %298 = tpu.matmul %296, %297, %cst_110 {dimension_numbers = #tpu.dot_dimension_numbers<[1], [0], [0], [1], [0, 0, 1, 1], [], []>} : vector<8x8xf32>, vector<8x8xf32>, vector<8x8xf32> -> vector<8x8xf32>
    %cst_111 = arith.constant 0.353553385 : f32
    %299 = vector.broadcast %cst_111 : f32 to vector<8x8xf32>
    %300 = arith.mulf %298, %299 : vector<8x8xf32>
    %301 = arith.addf %300, %244 : vector<8x8xf32>
    %cst_112 = arith.constant dense<0xFF800000> : vector<8xf32>
    %302 = vector.multi_reduction <maximumf>, %301, %cst_112 [1] : vector<8x8xf32> to vector<8xf32>
    %303 = vector.shape_cast %302 : vector<8xf32> to vector<8x1xf32>
    %304 = vector.broadcast %303 : vector<8x1xf32> to vector<8x8xf32>
    %305 = arith.subf %301, %304 : vector<8x8xf32>
    %306 = math.exp %305 : vector<8x8xf32>
    %cst_113 = arith.constant dense<0.000000e+00> : vector<8xf32>
    %307 = vector.multi_reduction <add>, %306, %cst_113 [1] : vector<8x8xf32> to vector<8xf32>
    %308 = vector.shape_cast %307 : vector<8xf32> to vector<8x1xf32>
    %309 = vector.broadcast %308 : vector<8x1xf32> to vector<8x8xf32>
    %310 = arith.divf %306, %309 : vector<8x8xf32>
    %311 = vector.extract_strided_slice %242 {offsets = [0, 24], sizes = [8, 8], strides = [1, 1]} : vector<8x32xf32> to vector<8x8xf32>
    %cst_114 = arith.constant dense<0.000000e+00> : vector<8x8xf32>
    %312 = tpu.matmul %310, %311, %cst_114 {dimension_numbers = #tpu.dot_dimension_numbers<[1], [0], [0], [1], [0, 0, 1, 1], [], []>} : vector<8x8xf32>, vector<8x8xf32>, vector<8x8xf32> -> vector<8x8xf32>
    %313 = tpu.concatenate %261, %278, %295, %312 in 1 : vector<8x8xf32>, vector<8x8xf32>, vector<8x8xf32>, vector<8x8xf32> -> vector<8x32xf32>
    %314 = vector.extract_strided_slice %232 {offsets = [8, 0], sizes = [8, 32], strides = [1, 1]} : vector<16x32xf32> to vector<8x32xf32>
    %315 = vector.extract_strided_slice %239 {offsets = [8, 0], sizes = [8, 32], strides = [1, 1]} : vector<16x32xf32> to vector<8x32xf32>
    %316 = vector.extract_strided_slice %13 {offsets = [1, 0, 0], sizes = [1, 8, 8], strides = [1, 1, 1]} : vector<2x8x8xf32> to vector<1x8x8xf32>
    %317 = vector.shape_cast %316 : vector<1x8x8xf32> to vector<8x8xf32>
    %318 = vector.extract_strided_slice %314 {offsets = [0, 0], sizes = [8, 8], strides = [1, 1]} : vector<8x32xf32> to vector<8x8xf32>
    %319 = vector.extract_strided_slice %240 {offsets = [0, 8], sizes = [8, 8], strides = [1, 1]} : vector<32x16xf32> to vector<8x8xf32>
    %cst_115 = arith.constant dense<0.000000e+00> : vector<8x8xf32>
    %320 = tpu.matmul %318, %319, %cst_115 {dimension_numbers = #tpu.dot_dimension_numbers<[1], [0], [0], [1], [0, 0, 1, 1], [], []>} : vector<8x8xf32>, vector<8x8xf32>, vector<8x8xf32> -> vector<8x8xf32>
    %cst_116 = arith.constant 0.353553385 : f32
    %321 = vector.broadcast %cst_116 : f32 to vector<8x8xf32>
    %322 = arith.mulf %320, %321 : vector<8x8xf32>
    %323 = arith.addf %322, %317 : vector<8x8xf32>
    %cst_117 = arith.constant dense<0xFF800000> : vector<8xf32>
    %324 = vector.multi_reduction <maximumf>, %323, %cst_117 [1] : vector<8x8xf32> to vector<8xf32>
    %325 = vector.shape_cast %324 : vector<8xf32> to vector<8x1xf32>
    %326 = vector.broadcast %325 : vector<8x1xf32> to vector<8x8xf32>
    %327 = arith.subf %323, %326 : vector<8x8xf32>
    %328 = math.exp %327 : vector<8x8xf32>
    %cst_118 = arith.constant dense<0.000000e+00> : vector<8xf32>
    %329 = vector.multi_reduction <add>, %328, %cst_118 [1] : vector<8x8xf32> to vector<8xf32>
    %330 = vector.shape_cast %329 : vector<8xf32> to vector<8x1xf32>
    %331 = vector.broadcast %330 : vector<8x1xf32> to vector<8x8xf32>
    %332 = arith.divf %328, %331 : vector<8x8xf32>
    %333 = vector.extract_strided_slice %315 {offsets = [0, 0], sizes = [8, 8], strides = [1, 1]} : vector<8x32xf32> to vector<8x8xf32>
    %cst_119 = arith.constant dense<0.000000e+00> : vector<8x8xf32>
    %334 = tpu.matmul %332, %333, %cst_119 {dimension_numbers = #tpu.dot_dimension_numbers<[1], [0], [0], [1], [0, 0, 1, 1], [], []>} : vector<8x8xf32>, vector<8x8xf32>, vector<8x8xf32> -> vector<8x8xf32>
    %335 = vector.extract_strided_slice %314 {offsets = [0, 8], sizes = [8, 8], strides = [1, 1]} : vector<8x32xf32> to vector<8x8xf32>
    %336 = vector.extract_strided_slice %240 {offsets = [8, 8], sizes = [8, 8], strides = [1, 1]} : vector<32x16xf32> to vector<8x8xf32>
    %cst_120 = arith.constant dense<0.000000e+00> : vector<8x8xf32>
    %337 = tpu.matmul %335, %336, %cst_120 {dimension_numbers = #tpu.dot_dimension_numbers<[1], [0], [0], [1], [0, 0, 1, 1], [], []>} : vector<8x8xf32>, vector<8x8xf32>, vector<8x8xf32> -> vector<8x8xf32>
    %cst_121 = arith.constant 0.353553385 : f32
    %338 = vector.broadcast %cst_121 : f32 to vector<8x8xf32>
    %339 = arith.mulf %337, %338 : vector<8x8xf32>
    %340 = arith.addf %339, %317 : vector<8x8xf32>
    %cst_122 = arith.constant dense<0xFF800000> : vector<8xf32>
    %341 = vector.multi_reduction <maximumf>, %340, %cst_122 [1] : vector<8x8xf32> to vector<8xf32>
    %342 = vector.shape_cast %341 : vector<8xf32> to vector<8x1xf32>
    %343 = vector.broadcast %342 : vector<8x1xf32> to vector<8x8xf32>
    %344 = arith.subf %340, %343 : vector<8x8xf32>
    %345 = math.exp %344 : vector<8x8xf32>
    %cst_123 = arith.constant dense<0.000000e+00> : vector<8xf32>
    %346 = vector.multi_reduction <add>, %345, %cst_123 [1] : vector<8x8xf32> to vector<8xf32>
    %347 = vector.shape_cast %346 : vector<8xf32> to vector<8x1xf32>
    %348 = vector.broadcast %347 : vector<8x1xf32> to vector<8x8xf32>
    %349 = arith.divf %345, %348 : vector<8x8xf32>
    %350 = vector.extract_strided_slice %315 {offsets = [0, 8], sizes = [8, 8], strides = [1, 1]} : vector<8x32xf32> to vector<8x8xf32>
    %cst_124 = arith.constant dense<0.000000e+00> : vector<8x8xf32>
    %351 = tpu.matmul %349, %350, %cst_124 {dimension_numbers = #tpu.dot_dimension_numbers<[1], [0], [0], [1], [0, 0, 1, 1], [], []>} : vector<8x8xf32>, vector<8x8xf32>, vector<8x8xf32> -> vector<8x8xf32>
    %352 = vector.extract_strided_slice %314 {offsets = [0, 16], sizes = [8, 8], strides = [1, 1]} : vector<8x32xf32> to vector<8x8xf32>
    %353 = vector.extract_strided_slice %240 {offsets = [16, 8], sizes = [8, 8], strides = [1, 1]} : vector<32x16xf32> to vector<8x8xf32>
    %cst_125 = arith.constant dense<0.000000e+00> : vector<8x8xf32>
    %354 = tpu.matmul %352, %353, %cst_125 {dimension_numbers = #tpu.dot_dimension_numbers<[1], [0], [0], [1], [0, 0, 1, 1], [], []>} : vector<8x8xf32>, vector<8x8xf32>, vector<8x8xf32> -> vector<8x8xf32>
    %cst_126 = arith.constant 0.353553385 : f32
    %355 = vector.broadcast %cst_126 : f32 to vector<8x8xf32>
    %356 = arith.mulf %354, %355 : vector<8x8xf32>
    %357 = arith.addf %356, %317 : vector<8x8xf32>
    %cst_127 = arith.constant dense<0xFF800000> : vector<8xf32>
    %358 = vector.multi_reduction <maximumf>, %357, %cst_127 [1] : vector<8x8xf32> to vector<8xf32>
    %359 = vector.shape_cast %358 : vector<8xf32> to vector<8x1xf32>
    %360 = vector.broadcast %359 : vector<8x1xf32> to vector<8x8xf32>
    %361 = arith.subf %357, %360 : vector<8x8xf32>
    %362 = math.exp %361 : vector<8x8xf32>
    %cst_128 = arith.constant dense<0.000000e+00> : vector<8xf32>
    %363 = vector.multi_reduction <add>, %362, %cst_128 [1] : vector<8x8xf32> to vector<8xf32>
    %364 = vector.shape_cast %363 : vector<8xf32> to vector<8x1xf32>
    %365 = vector.broadcast %364 : vector<8x1xf32> to vector<8x8xf32>
    %366 = arith.divf %362, %365 : vector<8x8xf32>
    %367 = vector.extract_strided_slice %315 {offsets = [0, 16], sizes = [8, 8], strides = [1, 1]} : vector<8x32xf32> to vector<8x8xf32>
    %cst_129 = arith.constant dense<0.000000e+00> : vector<8x8xf32>
    %368 = tpu.matmul %366, %367, %cst_129 {dimension_numbers = #tpu.dot_dimension_numbers<[1], [0], [0], [1], [0, 0, 1, 1], [], []>} : vector<8x8xf32>, vector<8x8xf32>, vector<8x8xf32> -> vector<8x8xf32>
    %369 = vector.extract_strided_slice %314 {offsets = [0, 24], sizes = [8, 8], strides = [1, 1]} : vector<8x32xf32> to vector<8x8xf32>
    %370 = vector.extract_strided_slice %240 {offsets = [24, 8], sizes = [8, 8], strides = [1, 1]} : vector<32x16xf32> to vector<8x8xf32>
    %cst_130 = arith.constant dense<0.000000e+00> : vector<8x8xf32>
    %371 = tpu.matmul %369, %370, %cst_130 {dimension_numbers = #tpu.dot_dimension_numbers<[1], [0], [0], [1], [0, 0, 1, 1], [], []>} : vector<8x8xf32>, vector<8x8xf32>, vector<8x8xf32> -> vector<8x8xf32>
    %cst_131 = arith.constant 0.353553385 : f32
    %372 = vector.broadcast %cst_131 : f32 to vector<8x8xf32>
    %373 = arith.mulf %371, %372 : vector<8x8xf32>
    %374 = arith.addf %373, %317 : vector<8x8xf32>
    %cst_132 = arith.constant dense<0xFF800000> : vector<8xf32>
    %375 = vector.multi_reduction <maximumf>, %374, %cst_132 [1] : vector<8x8xf32> to vector<8xf32>
    %376 = vector.shape_cast %375 : vector<8xf32> to vector<8x1xf32>
    %377 = vector.broadcast %376 : vector<8x1xf32> to vector<8x8xf32>
    %378 = arith.subf %374, %377 : vector<8x8xf32>
    %379 = math.exp %378 : vector<8x8xf32>
    %cst_133 = arith.constant dense<0.000000e+00> : vector<8xf32>
    %380 = vector.multi_reduction <add>, %379, %cst_133 [1] : vector<8x8xf32> to vector<8xf32>
    %381 = vector.shape_cast %380 : vector<8xf32> to vector<8x1xf32>
    %382 = vector.broadcast %381 : vector<8x1xf32> to vector<8x8xf32>
    %383 = arith.divf %379, %382 : vector<8x8xf32>
    %384 = vector.extract_strided_slice %315 {offsets = [0, 24], sizes = [8, 8], strides = [1, 1]} : vector<8x32xf32> to vector<8x8xf32>
    %cst_134 = arith.constant dense<0.000000e+00> : vector<8x8xf32>
    %385 = tpu.matmul %383, %384, %cst_134 {dimension_numbers = #tpu.dot_dimension_numbers<[1], [0], [0], [1], [0, 0, 1, 1], [], []>} : vector<8x8xf32>, vector<8x8xf32>, vector<8x8xf32> -> vector<8x8xf32>
    %386 = tpu.concatenate %334, %351, %368, %385 in 1 : vector<8x8xf32>, vector<8x8xf32>, vector<8x8xf32>, vector<8x8xf32> -> vector<8x32xf32>
    %387 = tpu.concatenate %313, %386 in 0 : vector<8x32xf32>, vector<8x32xf32> -> vector<16x32xf32>
    %c0_135 = arith.constant 0 : index
    %c0_136 = arith.constant 0 : index
    %388 = vector.load %arg14[%c0_135, %c0_136] : memref<32x32xf32, #tpu.memory_space<vmem>>, vector<32x32xf32>
    %cst_137 = arith.constant dense<0.000000e+00> : vector<16x32xf32>
    %389 = tpu.matmul %387, %388, %cst_137 {dimension_numbers = #tpu.dot_dimension_numbers<[1], [0], [0], [1], [0, 0, 1, 1], [], []>} : vector<16x32xf32>, vector<32x32xf32>, vector<16x32xf32> -> vector<16x32xf32>
    %c0_138 = arith.constant 0 : index
    %c0_139 = arith.constant 0 : index
    %390 = vector.load %arg15[%c0_138, %c0_139] : memref<1x32xf32, #tpu.memory_space<vmem>>, vector<1x32xf32>
    %391 = vector.broadcast %390 : vector<1x32xf32> to vector<16x32xf32>
    %392 = arith.addf %389, %391 : vector<16x32xf32>
    %393 = arith.addf %201, %392 : vector<16x32xf32>
    %c2 = arith.constant 2 : index
    %c0_140 = arith.constant 0 : index
    %c0_141 = arith.constant 0 : index
    %394 = vector.load %arg4[%c2, %c0_140, %c0_141] : memref<3x1x32xf32, #tpu.memory_space<vmem>>, vector<1x1x32xf32>
    %395 = vector.shape_cast %394 : vector<1x1x32xf32> to vector<1x32xf32>
    %c2_142 = arith.constant 2 : index
    %c0_143 = arith.constant 0 : index
    %c0_144 = arith.constant 0 : index
    %396 = vector.load %arg5[%c2_142, %c0_143, %c0_144] : memref<3x1x32xf32, #tpu.memory_space<vmem>>, vector<1x1x32xf32>
    %397 = vector.shape_cast %396 : vector<1x1x32xf32> to vector<1x32xf32>
    %cst_145 = arith.constant dense<0.000000e+00> : vector<16xf32>
    %398 = vector.multi_reduction <add>, %393, %cst_145 [1] : vector<16x32xf32> to vector<16xf32>
    %399 = vector.shape_cast %398 : vector<16xf32> to vector<16x1xf32>
    %cst_146 = arith.constant 3.200000e+01 : f32
    %400 = vector.broadcast %cst_146 : f32 to vector<16x1xf32>
    %401 = arith.divf %399, %400 : vector<16x1xf32>
    %402 = vector.broadcast %401 : vector<16x1xf32> to vector<16x32xf32>
    %403 = arith.subf %393, %402 : vector<16x32xf32>
    %404 = arith.mulf %403, %403 : vector<16x32xf32>
    %cst_147 = arith.constant dense<0.000000e+00> : vector<16xf32>
    %405 = vector.multi_reduction <add>, %404, %cst_147 [1] : vector<16x32xf32> to vector<16xf32>
    %406 = vector.shape_cast %405 : vector<16xf32> to vector<16x1xf32>
    %cst_148 = arith.constant 3.100000e+01 : f32
    %407 = vector.broadcast %cst_148 : f32 to vector<16x1xf32>
    %408 = arith.divf %406, %407 : vector<16x1xf32>
    %409 = vector.broadcast %401 : vector<16x1xf32> to vector<16x32xf32>
    %410 = arith.subf %393, %409 : vector<16x32xf32>
    %411 = vector.broadcast %395 : vector<1x32xf32> to vector<16x32xf32>
    %412 = arith.mulf %411, %410 : vector<16x32xf32>
    %413 = math.sqrt %408 : vector<16x1xf32>
    %cst_149 = arith.constant 9.99999997E-7 : f32
    %414 = vector.broadcast %cst_149 : f32 to vector<16x1xf32>
    %415 = arith.addf %413, %414 : vector<16x1xf32>
    %416 = vector.broadcast %415 : vector<16x1xf32> to vector<16x32xf32>
    %417 = arith.divf %412, %416 : vector<16x32xf32>
    %418 = vector.broadcast %397 : vector<1x32xf32> to vector<16x32xf32>
    %419 = arith.addf %417, %418 : vector<16x32xf32>
    %c0_150 = arith.constant 0 : index
    %c0_151 = arith.constant 0 : index
    %420 = vector.load %arg16[%c0_150, %c0_151] : memref<32x64xf32, #tpu.memory_space<vmem>>, vector<32x64xf32>
    %cst_152 = arith.constant dense<0.000000e+00> : vector<16x64xf32>
    %421 = tpu.matmul %419, %420, %cst_152 {dimension_numbers = #tpu.dot_dimension_numbers<[1], [0], [0], [1], [0, 0, 1, 1], [], []>} : vector<16x32xf32>, vector<32x64xf32>, vector<16x64xf32> -> vector<16x64xf32>
    %c0_153 = arith.constant 0 : index
    %c0_154 = arith.constant 0 : index
    %422 = vector.load %arg17[%c0_153, %c0_154] : memref<1x64xf32, #tpu.memory_space<vmem>>, vector<1x64xf32>
    %423 = vector.broadcast %422 : vector<1x64xf32> to vector<16x64xf32>
    %424 = arith.addf %421, %423 : vector<16x64xf32>
    %cst_155 = arith.constant 0.000000e+00 : f32
    %425 = vector.broadcast %cst_155 : f32 to vector<16x64xf32>
    %426 = arith.maximumf %424, %425 : vector<16x64xf32>
    %c0_156 = arith.constant 0 : index
    %c0_157 = arith.constant 0 : index
    %427 = vector.load %arg18[%c0_156, %c0_157] : memref<64x32xf32, #tpu.memory_space<vmem>>, vector<64x32xf32>
    %cst_158 = arith.constant dense<0.000000e+00> : vector<16x32xf32>
    %428 = tpu.matmul %426, %427, %cst_158 {dimension_numbers = #tpu.dot_dimension_numbers<[1], [0], [0], [1], [0, 0, 1, 1], [], []>} : vector<16x64xf32>, vector<64x32xf32>, vector<16x32xf32> -> vector<16x32xf32>
    %429 = arith.addf %393, %428 : vector<16x32xf32>
    %c0_159 = arith.constant 0 : index
    %c0_160 = arith.constant 0 : index
    %430 = vector.load %arg19[%c0_159, %c0_160] : memref<1x32xf32, #tpu.memory_space<vmem>>, vector<1x32xf32>
    %431 = vector.broadcast %430 : vector<1x32xf32> to vector<16x32xf32>
    %432 = arith.addf %429, %431 : vector<16x32xf32>
    %c0_161 = arith.constant 0 : index
    %c0_162 = arith.constant 0 : index
    %433 = vector.load %arg20[%c0_161, %c0_162] : memref<16x32xf32, #tpu.memory_space<vmem>>, vector<16x32xf32>
    tpu.vector_store %arg20[%c0_161, %c0_162], %432 {strides = array<i32>} : memref<16x32xf32, #tpu.memory_space<vmem>>, vector<16x32xf32>,
    return
  }
}

</mosaic_0001>

<bundles_post_ra>
// kernel: tpu_custom_call.1
= control target key start
LH: loop header
LB: loop body
LE: loop exit
PB: predicated region body
PF: predicated region fallthrough
CT: control target
= control target key end

     0   :  { %s5376_s0 = inlined_call_operand.hbm [shape: f32[16,32], index: 0, kind: input, shape index: {}, may-alias: {0,20}]   ;;  %s5377_s1 = inlined_call_operand.hbm [shape: f32[16,32], index: 1, kind: input, shape index: {}]   ;;  %s5378_s2 = inlined_call_operand.hbm [shape: f32[2,8,8], index: 2, kind: input, shape index: {}]   ;;  %s5379_s3 = inlined_call_operand.hbm [shape: f32[2,8,8], index: 3, kind: input, shape index: {}]   ;;  %s5380_s4 = inlined_call_operand.hbm [shape: f32[3,1,32], index: 4, kind: input, shape index: {}]   ;;  %s5381_s5 = inlined_call_operand.hbm [shape: f32[3,1,32], index: 5, kind: input, shape index: {}]   ;;  %s5382_s6 = inlined_call_operand.vmem [shape: f32[32,96], index: 6, kind: input, shape index: {}]   ;;  %s5383_s7 = inlined_call_operand.vmem [shape: f32[1,96], index: 7, kind: input, shape index: {}]   ;;  %s5384_s8 = inlined_call_operand.vmem [shape: f32[32,32], index: 8, kind: input, shape index: {}]   ;;  %s5385_s9 = inlined_call_operand.vmem [shape: f32[1,32], index: 9, kind: input, shape index: {}]   ;;  %s5386_s10 = inlined_call_operand.vmem [shape: f32[32,32], index: 10, kind: input, shape index: {}]   ;;  %s5387_s11 = inlined_call_operand.vmem [shape: f32[1,32], index: 11, kind: input, shape index: {}]   ;;  %s5388_s12 = inlined_call_operand.vmem [shape: f32[32,64], index: 12, kind: input, shape index: {}]   ;;  %s5389_s13 = inlined_call_operand.vmem [shape: f32[1,64], index: 13, kind: input, shape index: {}]   ;;  %s5390_s14 = inlined_call_operand.hbm [shape: f32[32,32], index: 14, kind: input, shape index: {}]   ;;  %s5391_s15 = inlined_call_operand.vmem [shape: f32[1,32], index: 15, kind: input, shape index: {}]   ;;  %s5392_s16 = inlined_call_operand.hbm [shape: f32[32,64], index: 16, kind: input, shape index: {}]   ;;  %s5393_s17 = inlined_call_operand.vmem [shape: f32[1,64], index: 17, kind: input, shape index: {}]   ;;  %s5394_s18 = inlined_call_operand.vmem [shape: f32[64,32], index: 18, kind: input, shape index: {}]   ;;  %s5395_s19 = inlined_call_operand.vmem [shape: f32[1,32], index: 19, kind: input, shape index: {}]   ;;  %s5396_s20 = inlined_call_operand.hbm [shape: f32[16,32], index: 20, kind: output, shape index: {}, may-alias: {0,20}]  }
   0x1   :  { %5408 = sst [smem:[#allocation23_spill]] %s5376_s0 }
   0x2   :  { %5409 = sst [smem:[#allocation24_spill]] %s5377_s1 }
   0x3   :  { %5410 = sst [smem:[#allocation25_spill]] %s5378_s2 }
   0x4   :  { %5411 = sst [smem:[#allocation26_spill]] %s5379_s3 }
   0x5   :  { %5412 = sst [smem:[#allocation27_spill]] %s5380_s4 }
   0x6   :  { %5413 = sst [smem:[#allocation28_spill]] %s5395_s19 }
   0x7   :  { %5414 = sst [smem:[#allocation29_spill]] %s5396_s20 }
   0x8   :  { %25 = vsyncpa [#allocation3], 0 }
   0x9   :  { %26 = vsyncpa [#allocation6], 0 }
   0xa   :  { %27 = vsyncpa [#allocation9], 0 }
   0xb   :  { %28 = vsyncpa [#allocation12], 0 }
   0xc   :  { %29 = vsyncpa [#allocation15], 0 }
   0xd   :  { %30 = vsyncpa [#allocation4], 0  ;;  %s4603_s1 = smov [#allocation5]   ;;  %s4604_s23 = smov [#allocation8]  }
   0xe   :  { %s48_s22 = sshll.u32 %s4603_s1, 4  ;;  %s72_s24 = sshll.u32 %s4604_s23, 4  ;;  %s49_s22 = int_to_ptr.vmem [resolvable:$true] %s48_s22  ;;  %s4736_s24 = int_to_ptr.vmem [resolvable:$true] %s72_s24 }
   0xf   :  { %s5415_s3 = sld [smem:[#allocation24_spill]] }
  0x15   :  { %s4393_s26 = scalar_lea.hbm %s5415_s3, 256 }
  0x16   :  { %p4394_p0 = scmp.ne.s32.totalorder %s5415_s3, %s4393_s26  ;;  %p4397_p1 = scmp.lt.u32.totalorder %s4393_s26, %s5415_s3 }
  0x18   :  { %p4399_p2 = pnand %p4397_p1, %p4394_p0 }
  0x1a   :  { %4402 = shalt.err (!%p4399_p2)
}
  0x1b   :  { %s4403_s30 = scalar_lea.vmem %s49_s22, 256  ;;  %p4408_p4 = scmp.lt.s32.totalorder %s49_s22, %s49_s22 }
  0x1c   :  { %p4404_p3 = scmp.ne.s32.totalorder %s49_s22, %s4403_s30  ;;  %p4409_p5 = scmp.lt.s32.totalorder %s4403_s30, %s4403_s30 }
  0x1e   :  { %p4410_p6 = por %p4409_p5, %p4408_p4 }
  0x20   :  { %p4411_p7 = pnand %p4410_p6, %p4404_p3 }
  0x22   :  { %4414 = shalt.err (!%p4411_p7)
}
  0x23   :  { %s5406_s0 = smov 128   ;;  %s4606_s21 = smov 8  }
  0x24   :  { %54 = dma.hbm_to_vmem [thread:$0]  %s5415_s3, 256, %s49_s22, [#allocation6], %s5406_s0, %s5406_s0, %s4606_s21  }
  0x25   :  { %s5416_s26 = sld [smem:[#allocation26_spill]] }
  0x2b   :  { %s4415_s27 = scalar_lea.hbm %s5416_s26, 256 }
  0x2c   :  { %p4416_p8 = scmp.ne.s32.totalorder %s5416_s26, %s4415_s27  ;;  %p4419_p9 = scmp.lt.u32.totalorder %s4415_s27, %s5416_s26 }
  0x2e   :  { %p4421_p10 = pnand %p4419_p9, %p4416_p8 }
  0x30   :  { %4424 = shalt.err (!%p4421_p10)
}
  0x31   :  { %s4425_s20 = scalar_lea.vmem %s4736_s24, 256  ;;  %p4430_p12 = scmp.lt.s32.totalorder %s4736_s24, %s4736_s24 }
  0x32   :  { %p4426_p11 = scmp.ne.s32.totalorder %s4736_s24, %s4425_s20  ;;  %p4431_p13 = scmp.lt.s32.totalorder %s4425_s20, %s4425_s20 }
  0x34   :  { %p4432_p0 = por %p4431_p13, %p4430_p12 }
  0x36   :  { %p4433_p1 = pnand %p4432_p0, %p4426_p11 }
  0x38   :  { %4436 = shalt.err (!%p4433_p1)
}
  0x39   :  { %78 = dma.hbm_to_vmem [thread:$0]  %s5416_s26, 256, %s4736_s24, [#allocation9], %s5406_s0, %s5406_s0, %s4606_s21  }
  0x3a   :  { %s4607_s1 = smov [#allocation11]   ;;  %s4608_s2 = smov [#allocation2]  }
  0x3b   :  { %s96_s23 = sshll.u32 %s4607_s1, 4  ;;  %s36_s25 = sshll.u32 %s4608_s2, 4  ;;  %s97_s23 = int_to_ptr.vmem [resolvable:$true] %s96_s23  ;;  %s4773_s25 = int_to_ptr.vmem [resolvable:$true] %s36_s25 }
  0x3c   :  { %s4437_s28 = scalar_lea.hbm %s5381_s5, 48 }
  0x3d   :  { %p4438_p2 = scmp.ne.s32.totalorder %s5381_s5, %s4437_s28  ;;  %p4441_p3 = scmp.lt.u32.totalorder %s4437_s28, %s5381_s5 }
  0x3f   :  { %p4443_p4 = pnand %p4441_p3, %p4438_p2 }
  0x41   :  { %4446 = shalt.err (!%p4443_p4)
}
  0x42   :  { %s4447_s24 = scalar_lea.vmem %s97_s23, 48  ;;  %s4451_s26 = scalar_lea.vmem %s97_s23, 64 }
  0x43   :  { %p4448_p5 = scmp.ne.s32.totalorder %s97_s23, %s4447_s24  ;;  %p4452_p6 = scmp.lt.s32.totalorder %s97_s23, %s97_s23 }
  0x44   :  { %p4453_p7 = scmp.lt.s32.totalorder %s4451_s26, %s4447_s24 }
  0x46   :  { %p4454_p8 = por %p4453_p7, %p4452_p6 }
  0x48   :  { %p4455_p9 = pnand %p4454_p8, %p4448_p5 }
  0x4a   :  { %4458 = shalt.err (!%p4455_p9)
}
  0x4b   :  { %s5403_s22 = smov 16   ;;  %s5405_s3 = smov 1  }
  0x4c   :  { %102 = dma.hbm_to_vmem [thread:$0]  %s5381_s5, 48, %s97_s23, [#allocation12], %s5403_s22, %s5403_s22, %s5405_s3  }
  0x4d   :  { %s5417_s20 = sld [smem:[#allocation23_spill]] }
  0x53   :  { %s4459_s28 = scalar_lea.hbm %s5417_s20, 256 }
  0x54   :  { %p4460_p10 = scmp.ne.s32.totalorder %s5417_s20, %s4459_s28  ;;  %p4463_p11 = scmp.lt.u32.totalorder %s4459_s28, %s5417_s20 }
  0x56   :  { %p4465_p12 = pnand %p4463_p11, %p4460_p10 }
  0x58   :  { %4468 = shalt.err (!%p4465_p12)
}
  0x59   :  { %s4469_s26 = scalar_lea.vmem %s4773_s25, 256  ;;  %p4474_p0 = scmp.lt.s32.totalorder %s4773_s25, %s4773_s25 }
  0x5a   :  { %p4470_p13 = scmp.ne.s32.totalorder %s4773_s25, %s4469_s26  ;;  %p4475_p1 = scmp.lt.s32.totalorder %s4469_s26, %s4469_s26 }
  0x5c   :  { %p4476_p2 = por %p4475_p1, %p4474_p0 }
  0x5e   :  { %p4477_p3 = pnand %p4476_p2, %p4470_p13 }
  0x60   :  { %4480 = shalt.err (!%p4477_p3)
}
  0x61   :  { %42 = dma.hbm_to_vmem [thread:$0]  %s5417_s20, 256, %s4773_s25, [#allocation3], %s5406_s0, %s5406_s0, %s4606_s21  }
  0x62   :  { %s4611_s1 = smov [#allocation7]   ;;  %s4612_s19 = smov [#allocation10]  }
  0x63   :  { %s60_s2 = sshll.u32 %s4611_s1, 4  ;;  %s84_s27 = sshll.u32 %s4612_s19, 4  ;;  %s61_s2 = int_to_ptr.vmem [resolvable:$true] %s60_s2  ;;  %s4810_s27 = int_to_ptr.vmem [resolvable:$true] %s84_s27 }
  0x64   :  { %s5418_s29 = sld [smem:[#allocation25_spill]] }
  0x6a   :  { %s4481_s30 = scalar_lea.hbm %s5418_s29, 256 }
  0x6b   :  { %p4482_p4 = scmp.ne.s32.totalorder %s5418_s29, %s4481_s30  ;;  %p4485_p5 = scmp.lt.u32.totalorder %s4481_s30, %s5418_s29 }
  0x6d   :  { %p4487_p6 = pnand %p4485_p5, %p4482_p4 }
  0x6f   :  { %4490 = shalt.err (!%p4487_p6)
}
  0x70   :  { %s4491_s25 = scalar_lea.vmem %s61_s2, 256  ;;  %p4496_p8 = scmp.lt.s32.totalorder %s61_s2, %s61_s2 }
  0x71   :  { %p4492_p7 = scmp.ne.s32.totalorder %s61_s2, %s4491_s25  ;;  %p4497_p9 = scmp.lt.s32.totalorder %s4491_s25, %s4491_s25 }
  0x73   :  { %p4498_p10 = por %p4497_p9, %p4496_p8 }
  0x75   :  { %p4499_p11 = pnand %p4498_p10, %p4492_p7 }
  0x77   :  { %4502 = shalt.err (!%p4499_p11)
}
  0x78   :  { %66 = dma.hbm_to_vmem [thread:$0]  %s5418_s29, 256, %s61_s2, [#allocation6], %s5406_s0, %s5406_s0, %s4606_s21  }
  0x79   :  { %s5419_s22 = sld [smem:[#allocation27_spill]] }
  0x7f   :  { %s4503_s3 = scalar_lea.hbm %s5419_s22, 48 }
  0x80   :  { %p4504_p12 = scmp.ne.s32.totalorder %s5419_s22, %s4503_s3  ;;  %p4507_p13 = scmp.lt.u32.totalorder %s4503_s3, %s5419_s22 }
  0x82   :  { %p4509_p0 = pnand %p4507_p13, %p4504_p12 }
  0x84   :  { %4512 = shalt.err (!%p4509_p0)
}
  0x85   :  { %s4513_s24 = scalar_lea.vmem %s4810_s27, 48  ;;  %s4517_s2 = scalar_lea.vmem %s4810_s27, 64 }
  0x86   :  { %p4514_p1 = scmp.ne.s32.totalorder %s4810_s27, %s4513_s24  ;;  %p4518_p2 = scmp.lt.s32.totalorder %s4810_s27, %s4810_s27 }
  0x87   :  { %p4519_p3 = scmp.lt.s32.totalorder %s4517_s2, %s4513_s24 }
  0x89   :  { %p4520_p4 = por %p4519_p3, %p4518_p2 }
  0x8b   :  { %p4521_p5 = pnand %p4520_p4, %p4514_p1 }
  0x8d   :  { %4524 = shalt.err (!%p4521_p5)
}
  0x8e   :  { %s5420_s29 = smov 1   ;;  %s5421_s26 = smov 16  }
  0x8f   :  { %90 = dma.hbm_to_vmem [thread:$0]  %s5419_s22, 48, %s4810_s27, [#allocation9], %s5421_s26, %s5421_s26, %s5420_s29  }
  0x90   :  { %s4613_s5 = smov [#allocation13]   ;;  %s4614_s1 = smov [#allocation14]  }
  0x91   :  { %s124_s23 = sshll.u32 %s4613_s5, 4  ;;  %s138_s3 = sshll.u32 %s4614_s1, 4  ;;  %s125_s23 = int_to_ptr.vmem [resolvable:$true] %s124_s23  ;;  %s4848_s3 = int_to_ptr.vmem [resolvable:$true] %s138_s3 }
  0x92   :  { %s4525_s4 = scalar_lea.hbm %s5390_s14, 512 }
  0x93   :  { %p4526_p6 = scmp.ne.s32.totalorder %s5390_s14, %s4525_s4  ;;  %p4529_p7 = scmp.lt.u32.totalorder %s4525_s4, %s5390_s14 }
  0x95   :  { %p4531_p8 = pnand %p4529_p7, %p4526_p6 }
  0x97   :  { %4534 = shalt.err (!%p4531_p8)
}
  0x98   :  { %s4535_s27 = scalar_lea.vmem %s125_s23, 512  ;;  %p4540_p10 = scmp.lt.s32.totalorder %s125_s23, %s125_s23 }
  0x99   :  { %p4536_p9 = scmp.ne.s32.totalorder %s125_s23, %s4535_s27  ;;  %p4541_p11 = scmp.lt.s32.totalorder %s4535_s27, %s4535_s27 }
  0x9b   :  { %p4542_p12 = por %p4541_p11, %p4540_p10 }
  0x9d   :  { %p4543_p13 = pnand %p4542_p12, %p4536_p9 }
  0x9f   :  { %4546 = shalt.err (!%p4543_p13)
}
  0xa0   :  { %s5422_s22 = smov 128   ;;  %s4547_s0 = scalar_lea.hbm %s5392_s16, 512 }
  0xa1   :  { %130 = dma.hbm_to_vmem [thread:$0]  %s5390_s14, 512, %s125_s23, [#allocation12], %s5422_s22, %s5422_s22, %s4606_s21  }
  0xa2   :  { %p4548_p0 = scmp.ne.s32.totalorder %s5392_s16, %s4547_s0  ;;  %p4551_p1 = scmp.lt.u32.totalorder %s4547_s0, %s5392_s16 }
  0xa4   :  { %p4553_p2 = pnand %p4551_p1, %p4548_p0 }
  0xa6   :  { %4556 = shalt.err (!%p4553_p2)
}
  0xa7   :  { %s4557_s30 = scalar_lea.vmem %s4848_s3, 512  ;;  %p4562_p4 = scmp.lt.s32.totalorder %s4848_s3, %s4848_s3 }
  0xa8   :  { %p4558_p3 = scmp.ne.s32.totalorder %s4848_s3, %s4557_s30  ;;  %p4563_p5 = scmp.lt.s32.totalorder %s4557_s30, %s4557_s30 }
  0xaa   :  { %p4564_p6 = por %p4563_p5, %p4562_p4 }
  0xac   :  { %p4565_p7 = pnand %p4564_p6, %p4558_p3 }
  0xae   :  { %4568 = shalt.err (!%p4565_p7)
}
  0xaf   :  { %144 = dma.hbm_to_vmem [thread:$0]  %s5392_s16, 512, %s4848_s3, [#allocation15], %s5422_s22, %s5422_s22, %s4606_s21  }
  0xb0   :  { %4591 = dma.done.wait [#allocation3], 256  }
  0xb1   :  { %4592 = vsyncadd [#allocation3], 4294967040 }
  0xb2   :  { %4593 = dma.done.wait [#allocation6], 512  }
  0xb3   :  { %4594 = vsyncadd [#allocation6], 4294966784 }
  0xb4   :  { %4595 = dma.done.wait [#allocation9], 304  }
  0xb5   :  { %4596 = vsyncadd [#allocation9], 4294966992 }
  0xb6   :  { %4597 = dma.done.wait [#allocation12], 560  }
  0xb7   :  { %4598 = vsyncadd [#allocation12], 4294966736 }
  0xb8   :  { %4599 = dma.done.wait [#allocation15], 512  }
  0xb9   :  { %4600 = vsyncadd [#allocation15], 4294966784  ;;  %vm193_vm0 = vcmask 261120   ;;  %v4885_v0 = vld [vmem:[#allocation2] sm:$0xff]  ;;  %v4887_v1 = vld [vmem:[#allocation2 + $0x8] sm:$0xff]  ;;  %v4615_v46 = vmov 0.0  }
  0xba   :  { %v194_v2 = vsel %vm193_vm0, %v4885_v0, 0.0  ;;  %v197_v3 = vsel %vm193_vm0, %v4887_v1, 0.0  ;;  %v252_v14 = vld [vmem:[%s5382_s6] sm:$0xff]  ;;  %v253_v15 = vld [vmem:[%s5382_s6 + $0x8] sm:$0xff]  ;;  %v254_v16 = vld [vmem:[%s5382_s6 + $0x10] sm:$0xff]  ;;  %3989 = vmatprep.subr.mxu0 %v4615_v46  ;;  %vm4616_vm5 = vmmov 0  }
  0xbb   :  { %195 = vadd.xlane.f32.xlu0 %v194_v2  ;;  %v4213_v17 = vpack.c.bf16 %v253_v15, %v252_v14  ;;  %v255_v18 = vld [vmem:[%s5382_s6 + $0x18] sm:$0xff]  ;;  %v3783_v36 = vld [vmem:[#allocation10] ss:$0 sm:$0xff]  ;;  %v3784_v39 = vld [vmem:[#allocation11] ss:$0 sm:$0xff]  ;;  %3991 = vmatprep.mubr.msk.f32.mxu0 %vm4616_vm5, %v4615_v46  ;;  %s4617_s0 = smov 88  }
  0xbc   :  { %v4217_v19 = vpack.c.bf16 %v255_v18, %v254_v16  ;;  %v3785_v47 = vld [vmem:[%s5383_s7] ss:$0 sm:$0xff]  ;;  %s4618_s1 = smov 96   ;;  %s4619_s19 = smov 120   ;;  %vm347_vm6 = vcmask 64512   ;;  %vm1025_vm9 = vcmask 130048  }
  0xbd   :  { %4214 = vmatprep.subr.bf16.mxu1 %v4213_v17  ;;  %s4620_s28 = smov 112   ;;  %s4621_s7 = smov 80   ;;  %vm1027_vm10 = vcmask 195584  }
  0xbe   :  { %4216 = vmatpush3.bf16.msra.mxu1 %v4213_v17  ;;  %s4622_s4 = smov 104   ;;  %s4623_s30 = smov 72  }
  0xbf   :  { %198 = vadd.xlane.f32.xlu0 %v197_v3  ;;  %4218 = vmatprep.subr.bf16.mxu1 %v4217_v19  ;;  %s4625_s14 = smov 64   ;;  %s4626_s23 = smov 48  }
  0xc0   :  { %s4627_s16 = smov 40   ;;  %s4628_s3 = smov 56  }
  0xc2   :  { %4220 = vmatpush3.bf16.msra.mxu1 %v4217_v19 }
  0xc3   :  { %3979 = vmatprep.subr.mxu1 %v4615_v46 }
 0x148   :  { %v196_v4 = vpop.xlane.xlu0 %195 }
 0x149   :  { %v201_v5 = vmul.f32 0.03125, %v196_v4  ;;  %v179_v4 = vld [vmem:[#allocation7] sm:$0xff] }
 0x14a   :  { %vm181_vm7 = vcmp.gt.f32.partialorder %v179_v4, 0.0 }
 0x14b   :  { %v203_v6 = vsub.f32 %v4885_v0, %v201_v5 }
 0x14c   :  { %v199_v7 = vpop.xlane.xlu0 %198 }
 0x14d   :  { %v202_v8 = vmul.f32 0.03125, %v199_v7  ;;  %v205_v9 = vmul.f32 %v203_v6, %v203_v6  ;;  %v222_v37 = vmul.f32 %v3783_v36, %v203_v6  ;;  %v4624_v6 = vmov -1e+09  }
 0x14e   :  { %v183_v7 = vsel %vm181_vm7, 0.0, %v4624_v6 }
 0x14f   :  { %v204_v10 = vsub.f32 %v4887_v1, %v202_v8  ;;  %v207_v11 = vsel %vm193_vm0, %v205_v9, 0.0 }
 0x150   :  { %208 = vadd.xlane.f32.xlu1 %v207_v11 }
 0x151   :  { %v206_v12 = vmul.f32 %v204_v10, %v204_v10  ;;  %v223_v41 = vmul.f32 %v3783_v36, %v204_v10 }
 0x153   :  { %v210_v13 = vsel %vm193_vm0, %v206_v12, 0.0 }
 0x154   :  { %211 = vadd.xlane.f32.xlu1 %v210_v13 }
 0x1dd   :  { %v209_v20 = vpop.xlane.xlu1 %208 }
 0x1de   :  { %v214_v21 = vmul.f32 0.032258064, %v209_v20  ;;  %v180_v20 = vld [vmem:[#allocation7 + $0x8] sm:$0xff] }
 0x1df   :  { %vm182_vm8 = vcmp.gt.f32.partialorder %v180_v20, 0.0 }
 0x1e0   :  { %4305 = vrsqrt.f32 %v214_v21  ;;  %vm226_vm1 = vcmp.eq.f32.partialorder %v214_v21, inf  ;;  %v229_v26 = vand.u32 2147483648, %v214_v21  ;;  %vm228_vm2 = vcmp.eq.f32.partialorder %v214_v21, 0.0 }
 0x1e1   :  { %v212_v22 = vpop.xlane.xlu1 %211 }
 0x1e2   :  { %v215_v23 = vmul.f32 0.032258064, %v212_v22 }
 0x1e4   :  { %4307 = vrsqrt.f32 %v215_v23  ;;  %vm233_vm3 = vcmp.eq.f32.partialorder %v215_v23, inf  ;;  %v236_v32 = vand.u32 2147483648, %v215_v23  ;;  %vm235_vm4 = vcmp.eq.f32.partialorder %v215_v23, 0.0 }
 0x1ea   :  { %v4306_v24 = vpop.eup %4305 }
 0x1eb   :  { %v225_v25 = vmul.f32 %v4306_v24, %v214_v21 }
 0x1ed   :  { %v227_v27 = vsel %vm226_vm1, %v214_v21, %v225_v25 }
 0x1ee   :  { %v4308_v28 = vpop.eup %4307  ;;  %v230_v29 = vsel %vm228_vm2, %v229_v26, %v227_v27 }
 0x1ef   :  { %v232_v30 = vmul.f32 %v4308_v28, %v215_v23  ;;  %v238_v31 = vadd.f32 1e-06, %v230_v29  ;;  %v184_v28 = vsel %vm182_vm8, 0.0, %v4624_v6 }
 0x1f1   :  { %v234_v33 = vsel %vm233_vm3, %v215_v23, %v232_v30  ;;  %4309 = vrcp.f32 %v238_v31 }
 0x1f2   :  { %v237_v34 = vsel %vm235_vm4, %v236_v32, %v234_v33 }
 0x1f3   :  { %v239_v35 = vadd.f32 1e-06, %v237_v34 }
 0x1f5   :  { %4311 = vrcp.f32 %v239_v35 }
 0x1fb   :  { %v4310_v38 = vpop.eup %4309 }
 0x1fc   :  { %v241_v40 = vmul.f32 %v4310_v38, %v222_v37 }
 0x1fe   :  { %v250_v42 = vadd.f32 %v3784_v39, %v241_v40 }
 0x1ff   :  { %v4312_v43 = vpop.eup %4311 }
 0x200   :  { %v243_v44 = vmul.f32 %v4312_v43, %v223_v41  ;;  %3976 = vmatprep.mubr.msk.f32.mxu1 %vm193_vm0, %v250_v42 }
 0x202   :  { %v251_v45 = vadd.f32 %v3784_v39, %v243_v44 }
 0x204   :  { %3977 = vmatmul.mubr.msk.f32.vlgmr.msra.gmra.mrb[0].mxu1 %vm193_vm0, %v251_v45 }
 0x205   :  { %3981 = vmatprep.mubr.msk.f32.mxu1 %vm4616_vm5, %v4615_v46 }
 0x2d7   :  { %v3978_v48 = vpop.f32.mrb[0].mxu1 }
 0x2d8   :  { %v335_v49 = vpop.f32.mrb[1].mxu1  ;;  %v4934_v51 = vadd.f32 %v3978_v48, %v3785_v47 }
 0x2d9   :  { %v4920_v50 = vadd.f32 %v3785_v47, %v335_v49 }
 0x2db   :  { %513 = vrot.lane.b32.xlu1 %v4920_v50, %s4617_s0  ;;  %345 = vrot.lane.b32.xlu0 %v4920_v50, %s4618_s1 }
 0x2df   :  { %511 = vrot.lane.b32.xlu1 %v4920_v50, %s4619_s19  ;;  %678 = vrot.lane.b32.xlu0 %v4920_v50, %s4620_s28 }
 0x2e3   :  { %680 = vrot.lane.b32.xlu1 %v4920_v50, %s4621_s7  ;;  %845 = vrot.lane.b32.xlu0 %v4920_v50, %s4622_s4 }
 0x2e7   :  { %847 = vrot.lane.b32.xlu1 %v4920_v50, %s4623_s30  ;;  %1197 = vrot.lane.b32.xlu0 %v4934_v51, %s4617_s0 }
 0x2eb   :  { %1030 = vrot.lane.b32.xlu1 %v4934_v51, %s4618_s1  ;;  %1364 = vrot.lane.b32.xlu0 %v4934_v51, %s4621_s7 }
 0x2ef   :  { %1195 = vrot.lane.b32.xlu1 %v4934_v51, %s4619_s19  ;;  %1531 = vrot.lane.b32.xlu0 %v4934_v51, %s4623_s30 }
 0x2f3   :  { %1362 = vrot.lane.b32.xlu1 %v4934_v51, %s4620_s28 }
 0x2f7   :  { %1529 = vrot.lane.b32.xlu1 %v4934_v51, %s4622_s4 }
 0x34d   :  { %v514_v52 = vpop.permute.xlu1 %513  ;;  %v346_v53 = vpop.permute.xlu0 %345 }
 0x34e   :  { %3980 = vmatpush3.xpose.msk.msra.mxu1 %vm347_vm6, %v346_v53  ;;  %3990 = vmatpush3.xpose.msk.msra.mxu0 %vm347_vm6, %v514_v52 }
 0x34f   :  { %3999 = vmatprep.subr.mxu0 %v4615_v46  ;;  %3984 = vmatprep.subr.mxu1 %v4615_v46 }
 0x351   :  { %v512_v54 = vpop.permute.xlu1 %511  ;;  %3982 = vmatmul.mubr.msk.f32.vlgmr.msra.gmra.mrb[2].mxu1 %vm347_vm6, %v4920_v50  ;;  %v679_v55 = vpop.permute.xlu0 %678 }
 0x352   :  { %3992 = vmatmul.mubr.msk.f32.vlgmr.msra.gmra.mrb[0].mxu0 %vm347_vm6, %v512_v54  ;;  %3986 = vmatprep.mubr.msk.f32.mxu1 %vm4616_vm5, %v4615_v46 }
 0x353   :  { %4001 = vmatprep.mubr.msk.f32.mxu0 %vm4616_vm5, %v4615_v46 }
 0x355   :  { %v681_v56 = vpop.permute.xlu1 %680  ;;  %v846_v57 = vpop.permute.xlu0 %845 }
 0x356   :  { %4000 = vmatpush3.xpose.msk.msra.mxu0 %vm347_vm6, %v681_v56 }
 0x357   :  { %4009 = vmatprep.subr.mxu0 %v4615_v46 }
 0x359   :  { %v848_v58 = vpop.permute.xlu1 %847  ;;  %4002 = vmatmul.mubr.msk.f32.vlgmr.msra.gmra.mrb[2].mxu0 %vm347_vm6, %v679_v55  ;;  %v1198_v59 = vpop.permute.xlu0 %1197 }
 0x35a   :  { %4010 = vmatpush3.xpose.msk.msra.mxu0 %vm347_vm6, %v848_v58  ;;  %4011 = vmatprep.mubr.msk.f32.mxu0 %vm4616_vm5, %v4615_v46 }
 0x35b   :  { %4019 = vmatprep.subr.mxu0 %v4615_v46 }
 0x35d   :  { %v1031_v60 = vpop.permute.xlu1 %1030  ;;  %4012 = vmatmul.mubr.msk.f32.vlgmr.msra.gmra.mrb[4].mxu0 %vm347_vm6, %v846_v57  ;;  %v1365_v62 = vpop.permute.xlu0 %1364 }
 0x35e   :  { %4020 = vmatpush3.xpose.msk.msra.mxu0 %vm347_vm6, %v1031_v60  ;;  %4021 = vmatprep.mubr.msk.f32.mxu0 %vm4616_vm5, %v4615_v46 }
 0x35f   :  { %4029 = vmatprep.subr.mxu0 %v4615_v46 }
 0x361   :  { %v1196_v61 = vpop.permute.xlu1 %1195  ;;  %4022 = vmatmul.mubr.msk.f32.vlgmr.msra.gmra.mrb[6].mxu0 %vm347_vm6, %v4934_v51  ;;  %v1532_v2 = vpop.permute.xlu0 %1531 }
 0x362   :  { %4030 = vmatpush3.xpose.msk.msra.mxu0 %vm347_vm6, %v1198_v59  ;;  %4031 = vmatprep.mubr.msk.f32.mxu0 %vm4616_vm5, %v4615_v46 }
 0x363   :  { %4039 = vmatprep.subr.mxu0 %v4615_v46 }
 0x365   :  { %4032 = vmatmul.mubr.msk.f32.vlgmr.msra.gmra.mrb[8].mxu0 %vm347_vm6, %v1196_v61  ;;  %v1363_v63 = vpop.permute.xlu1 %1362 }
 0x366   :  { %4040 = vmatpush3.xpose.msk.msra.mxu0 %vm347_vm6, %v1365_v62  ;;  %4041 = vmatprep.mubr.msk.f32.mxu0 %vm4616_vm5, %v4615_v46 }
 0x367   :  { %4049 = vmatprep.subr.mxu0 %v4615_v46 }
 0x369   :  { %4042 = vmatmul.mubr.msk.f32.vlgmr.msra.gmra.mrb[10].mxu0 %vm347_vm6, %v1363_v63  ;;  %v1530_v3 = vpop.permute.xlu1 %1529 }
 0x36a   :  { %4050 = vmatpush3.xpose.msk.msra.mxu0 %vm347_vm6, %v1532_v2  ;;  %4051 = vmatprep.mubr.msk.f32.mxu0 %vm4616_vm5, %v4615_v46 }
 0x36d   :  { %4052 = vmatmul.mubr.msk.f32.vlgmr.msra.gmra.mrb[12].mxu0 %vm347_vm6, %v1530_v3 }
 0x424   :  { %v418_v5 = vpop.f32.mrb[2].mxu1 }
 0x425   :  { %v422_v8 = vmul.f32 0.35355338, %v418_v5  ;;  %v3983_v9 = vpop.f32.mrb[3].mxu1  ;;  %v585_v10 = vpop.f32.mrb[0].mxu0 }
 0x426   :  { %v589_v11 = vmul.f32 0.35355338, %v585_v10  ;;  %v3993_v12 = vpop.f32.mrb[1].mxu0 }
 0x427   :  { %v423_v13 = vadd.f32 %v422_v8, %v183_v7 }
 0x428   :  { %v590_v14 = vadd.f32 %v589_v11, %v183_v7 }
 0x429   :  { %v424_v15 = vsel %vm347_vm6, %v423_v13, -inf }
 0x42a   :  { %425 = vmax.xlane.f32.xlu0 %v424_v15  ;;  %v591_v16 = vsel %vm347_vm6, %v590_v14, -inf }
 0x42b   :  { %592 = vmax.xlane.f32.xlu1 %v591_v16 }
 0x42c   :  { %v752_v17 = vpop.f32.mrb[2].mxu0 }
 0x42d   :  { %v756_v18 = vmul.f32 0.35355338, %v752_v17  ;;  %v4003_v19 = vpop.f32.mrb[3].mxu0 }
 0x42f   :  { %v4994_v21 = vadd.f32 %v756_v18, %v183_v7 }
 0x430   :  { %v919_v22 = vpop.f32.mrb[4].mxu0 }
 0x431   :  { %v923_v23 = vmul.f32 0.35355338, %v919_v22  ;;  %v4013_v24 = vpop.f32.mrb[5].mxu0  ;;  %v758_v25 = vsel %vm347_vm6, %v4994_v21, -inf }
 0x432   :  { %759 = vmax.xlane.f32.xlu0 %v758_v25 }
 0x433   :  { %v924_v26 = vadd.f32 %v923_v23, %v183_v7 }
 0x434   :  { %v1102_v27 = vpop.f32.mrb[6].mxu0 }
 0x435   :  { %v1106_v29 = vmul.f32 0.35355338, %v1102_v27  ;;  %v4023_v30 = vpop.f32.mrb[7].mxu0  ;;  %v925_v31 = vsel %vm347_vm6, %v924_v26, -inf }
 0x436   :  { %926 = vmax.xlane.f32.xlu0 %v925_v31 }
 0x437   :  { %v5000_v32 = vadd.f32 %v1106_v29, %v184_v28 }
 0x438   :  { %v1269_v33 = vpop.f32.mrb[8].mxu0 }
 0x439   :  { %v1273_v34 = vmul.f32 0.35355338, %v1269_v33  ;;  %v4033_v35 = vpop.f32.mrb[9].mxu0  ;;  %v1108_v36 = vsel %vm347_vm6, %v5000_v32, -inf }
 0x43a   :  { %1109 = vmax.xlane.f32.xlu0 %v1108_v36 }
 0x43b   :  { %v1274_v37 = vadd.f32 %v1273_v34, %v184_v28 }
 0x43c   :  { %v1436_v38 = vpop.f32.mrb[10].mxu0 }
 0x43d   :  { %v1440_v39 = vmul.f32 0.35355338, %v1436_v38  ;;  %v4043_v40 = vpop.f32.mrb[11].mxu0  ;;  %v1275_v41 = vsel %vm347_vm6, %v1274_v37, -inf }
 0x43e   :  { %1276 = vmax.xlane.f32.xlu1 %v1275_v41 }
 0x43f   :  { %v1441_v42 = vadd.f32 %v1440_v39, %v184_v28 }
 0x440   :  { %v1603_v43 = vpop.f32.mrb[12].mxu0 }
 0x441   :  { %v4053_v44 = vpop.f32.mrb[13].mxu0  ;;  %v1442_v45 = vsel %vm347_vm6, %v1441_v42, -inf  ;;  %v1607_v47 = vmul.f32 0.35355338, %v1603_v43 }
 0x442   :  { %1443 = vmax.xlane.f32.xlu0 %v1442_v45 }
 0x443   :  { %v1608_v48 = vadd.f32 %v1607_v47, %v184_v28 }
 0x445   :  { %v1609_v49 = vsel %vm347_vm6, %v1608_v48, -inf }
 0x44f   :  { %435 = vrot.lane.b32.xlu1 %v4920_v50, %s4625_s14 }
 0x473   :  { %1610 = vmax.xlane.f32.xlu1 %v1609_v49 }
 0x484   :  { %769 = vrot.lane.b32.xlu1 %v4920_v50, %s4626_s23 }
 0x488   :  { %936 = vrot.lane.b32.xlu1 %v4920_v50, %s4627_s16 }
 0x48c   :  { %1119 = vrot.lane.b32.xlu1 %v4934_v51, %s4625_s14  ;;  %s4629_s14 = smov 24  }
 0x4b7   :  { %v426_v52 = vpop.xlane.xlu0 %425 }
 0x4b8   :  { %v427_v53 = vsub.f32 %v423_v13, %v426_v52  ;;  %v593_v54 = vpop.xlane.xlu1 %592 }
 0x4b9   :  { %v594_v55 = vsub.f32 %v590_v14, %v593_v54 }
 0x4ba   :  { %v428_v56 = vmul.f32 1.442695, %v427_v53 }
 0x4bb   :  { %v595_v57 = vmul.f32 1.442695, %v594_v55 }
 0x4bc   :  { %4313 = vpow2.f32 %v428_v56 }
 0x4bd   :  { %4315 = vpow2.f32 %v595_v57 }
 0x4bf   :  { %v760_v58 = vpop.xlane.xlu0 %759 }
 0x4c0   :  { %v761_v9 = vsub.f32 %v4994_v21, %v760_v58 }
 0x4c2   :  { %v762_v11 = vmul.f32 1.442695, %v761_v9 }
 0x4c3   :  { %v927_v59 = vpop.xlane.xlu0 %926 }
 0x4c4   :  { %v928_v60 = vsub.f32 %v924_v26, %v927_v59 }
 0x4c6   :  { %v4314_v61 = vpop.eup %4313  ;;  %v929_v62 = vmul.f32 1.442695, %v928_v60 }
 0x4c7   :  { %v5013_v63 = vpop.eup %4315  ;;  %v430_v2 = vsel %vm347_vm6, %v4314_v61, 0.0  ;;  %v1110_v10 = vpop.xlane.xlu0 %1109 }
 0x4c8   :  { %4317 = vpow2.f32 %v929_v62  ;;  %431 = vadd.xlane.f32.xlu0 %v430_v2  ;;  %v597_v3 = vsel %vm347_vm6, %v5013_v63, 0.0  ;;  %v1111_v12 = vsub.f32 %v5000_v32, %v1110_v10 }
 0x4c9   :  { %598 = vadd.xlane.f32.xlu1 %v597_v3  ;;  %4319 = vpow2.f32 %v762_v11 }
 0x4ca   :  { %v1112_v14 = vmul.f32 1.442695, %v1111_v12  ;;  %v1713_v12 = vld [vmem:[%s5384_s8 + $0x10] sm:$0xff] }
 0x4cb   :  { %v1277_v4 = vpop.xlane.xlu1 %1276 }
 0x4cc   :  { %4321 = vpow2.f32 %v1112_v14  ;;  %v1278_v16 = vsub.f32 %v1274_v37, %v1277_v4 }
 0x4ce   :  { %v1279_v18 = vmul.f32 1.442695, %v1278_v16 }
 0x4cf   :  { %v436_v5 = vpop.permute.xlu1 %435  ;;  %v1444_v13 = vpop.xlane.xlu0 %1443 }
 0x4d0   :  { %3985 = vmatpush3.msra.mxu1 %v436_v5  ;;  %v1445_v15 = vsub.f32 %v1441_v42, %v1444_v13  ;;  %v1714_v13 = vld [vmem:[%s5384_s8 + $0x18] sm:$0xff] }
 0x4d1   :  { %3994 = vmatprep.subr.mxu1 %v4615_v46 }
 0x4d2   :  { %v5019_v7 = vpop.eup %4317  ;;  %v1446_v17 = vmul.f32 1.442695, %v1445_v15  ;;  %v4225_v15 = vpack.c.bf16 %v1714_v13, %v1713_v12 }
 0x4d3   :  { %v931_v8 = vsel %vm347_vm6, %v5019_v7, 0.0  ;;  %v4320_v19 = vpop.eup %4319 }
 0x4d4   :  { %932 = vadd.xlane.f32.xlu1 %v931_v8  ;;  %4323 = vpow2.f32 %v1446_v17  ;;  %v1712_v8 = vld [vmem:[%s5384_s8 + $0x8] sm:$0xff] }
 0x4d5   :  { %4325 = vpow2.f32 %v1279_v18 }
 0x4d6   :  { %v4322_v20 = vpop.eup %4321 }
 0x4d7   :  { %v1114_v22 = vsel %vm347_vm6, %v4322_v20, 0.0 }
 0x4de   :  { %602 = vrot.lane.b32.xlu0 %v4920_v50, %s4628_s3  ;;  %v764_v50 = vsel %vm347_vm6, %v4320_v19, 0.0  ;;  %v5029_v23 = vpop.eup %4323 }
 0x4df   :  { %v1448_v26 = vsel %vm347_vm6, %v5029_v23, 0.0  ;;  %v4326_v27 = vpop.eup %4325 }
 0x4e0   :  { %v1281_v28 = vsel %vm347_vm6, %v4326_v27, 0.0 }
 0x4e5   :  { %1286 = vrot.lane.b32.xlu1 %v4934_v51, %s4628_s3 }
 0x4fd   :  { %765 = vadd.xlane.f32.xlu0 %v764_v50 }
 0x500   :  { %v1611_v21 = vpop.xlane.xlu1 %1610 }
 0x501   :  { %v1612_v24 = vsub.f32 %v1608_v48, %v1611_v21  ;;  %1115 = vadd.xlane.f32.xlu0 %v1114_v22 }
 0x503   :  { %v1613_v25 = vmul.f32 1.442695, %v1612_v24 }
 0x504   :  { %v770_v31 = vpop.permute.xlu1 %769 }
 0x505   :  { %4327 = vpow2.f32 %v1613_v25  ;;  %1449 = vadd.xlane.f32.xlu0 %v1448_v26 }
 0x508   :  { %v937_v32 = vpop.permute.xlu1 %936 }
 0x509   :  { %1282 = vadd.xlane.f32.xlu1 %v1281_v28 }
 0x50c   :  { %v1120_v33 = vpop.permute.xlu1 %1119 }
 0x50f   :  { %v5034_v29 = vpop.eup %4327 }
 0x510   :  { %v1615_v30 = vsel %vm347_vm6, %v5034_v29, 0.0 }
 0x511   :  { %1616 = vadd.xlane.f32.xlu0 %v1615_v30 }
 0x51a   :  { %1620 = vrot.lane.b32.xlu1 %v4934_v51, %s4627_s16  ;;  %s4630_s16 = smov [#allocation16]  }
 0x527   :  { %1453 = vrot.lane.b32.xlu0 %v4934_v51, %s4626_s23 }
 0x555   :  { %v432_v34 = vpop.xlane.xlu0 %431 }
 0x556   :  { %4329 = vrcp.f32 %v432_v34  ;;  %v599_v35 = vpop.xlane.xlu1 %598 }
 0x557   :  { %4331 = vrcp.f32 %v599_v35 }
 0x559   :  { %v603_v39 = vpop.permute.xlu0 %602 }
 0x560   :  { %v4330_v36 = vpop.eup %4329 }
 0x561   :  { %v434_v37 = vmul.f32 %v4330_v36, %v4314_v61  ;;  %v4332_v38 = vpop.eup %4331  ;;  %v933_v51 = vpop.xlane.xlu1 %932  ;;  %v3812_v36 = vld [vmem:[%s5385_s9] ss:$0 sm:$0xff] }
 0x562   :  { %v601_v40 = vmul.f32 %v4332_v38, %v5013_v63 }
 0x563   :  { %3987 = vmatmul.mubr.msk.f32.vlgmr.msra.gmra.mrb[4].mxu1 %vm347_vm6, %v434_v37 }
 0x564   :  { %3995 = vmatpush3.msra.mxu1 %v603_v39  ;;  %3996 = vmatprep.mubr.msk.f32.mxu1 %vm4616_vm5, %v4615_v46 }
 0x565   :  { %4004 = vmatprep.subr.mxu1 %v4615_v46  ;;  %v1287_v43 = vpop.permute.xlu1 %1286 }
 0x567   :  { %3997 = vmatmul.mubr.msk.f32.vlgmr.msra.gmra.mrb[6].mxu1 %vm347_vm6, %v601_v40 }
 0x568   :  { %4005 = vmatpush3.msra.mxu1 %v770_v31  ;;  %4006 = vmatprep.mubr.msk.f32.mxu1 %vm4616_vm5, %v4615_v46 }
 0x569   :  { %4014 = vmatprep.subr.mxu1 %v4615_v46 }
 0x58a   :  { %v766_v41 = vpop.xlane.xlu0 %765 }
 0x58b   :  { %4333 = vrcp.f32 %v766_v41 }
 0x58c   :  { %4335 = vrcp.f32 %v933_v51 }
 0x58e   :  { %v1116_v42 = vpop.xlane.xlu0 %1115 }
 0x58f   :  { %4337 = vrcp.f32 %v1116_v42 }
 0x592   :  { %v1450_v47 = vpop.xlane.xlu0 %1449 }
 0x595   :  { %v4334_v44 = vpop.eup %4333 }
 0x596   :  { %v768_v45 = vmul.f32 %v4334_v44, %v4320_v19  ;;  %v1283_v48 = vpop.xlane.xlu1 %1282  ;;  %v4336_v49 = vpop.eup %4335 }
 0x597   :  { %4339 = vrcp.f32 %v1283_v48  ;;  %v935_v52 = vmul.f32 %v4336_v49, %v5019_v7  ;;  %v1711_v7 = vld [vmem:[%s5384_s8] sm:$0xff] }
 0x598   :  { %4007 = vmatmul.mubr.msk.f32.vlgmr.msra.gmra.mrb[8].mxu1 %vm347_vm6, %v768_v45  ;;  %4341 = vrcp.f32 %v1450_v47  ;;  %v4221_v10 = vpack.c.bf16 %v1712_v8, %v1711_v7 }
 0x599   :  { %4015 = vmatpush3.msra.mxu1 %v937_v32  ;;  %4016 = vmatprep.mubr.msk.f32.mxu1 %vm4616_vm5, %v4615_v46  ;;  %v4338_v53 = vpop.eup %4337 }
 0x59a   :  { %4024 = vmatprep.subr.mxu1 %v4615_v46  ;;  %v1118_v54 = vmul.f32 %v4338_v53, %v4322_v20  ;;  %v1621_v61 = vpop.permute.xlu1 %1620  ;;  %4222 = vmatprep.subr.bf16.mxu0 %v4221_v10 }
 0x59b   :  { %4224 = vmatpush3.bf16.msra.mxu0 %v4221_v10 }
 0x59c   :  { %4017 = vmatmul.mubr.msk.f32.vlgmr.msra.gmra.mrb[10].mxu1 %vm347_vm6, %v935_v52  ;;  %4226 = vmatprep.subr.bf16.mxu0 %v4225_v15 }
 0x59d   :  { %4025 = vmatpush3.msra.mxu1 %v1120_v33  ;;  %4026 = vmatprep.mubr.msk.f32.mxu1 %vm4616_vm5, %v4615_v46 }
 0x59e   :  { %v1617_v55 = vpop.xlane.xlu0 %1616  ;;  %4034 = vmatprep.subr.mxu1 %v4615_v46 }
 0x59f   :  { %4343 = vrcp.f32 %v1617_v55  ;;  %4228 = vmatpush3.bf16.msra.mxu0 %v4225_v15  ;;  %v1957_v55 = vld [vmem:[%s5388_s12] sm:$0xff] }
 0x5a0   :  { %4027 = vmatmul.mubr.msk.f32.vlgmr.msra.gmra.mrb[12].mxu1 %vm347_vm6, %v1118_v54 }
 0x5a1   :  { %v4340_v56 = vpop.eup %4339  ;;  %4035 = vmatpush3.msra.mxu1 %v1287_v43  ;;  %4036 = vmatprep.mubr.msk.f32.mxu1 %vm4616_vm5, %v4615_v46 }
 0x5a2   :  { %v1285_v57 = vmul.f32 %v4340_v56, %v4326_v27  ;;  %v1454_v58 = vpop.permute.xlu0 %1453  ;;  %4044 = vmatprep.subr.mxu1 %v4615_v46  ;;  %v4342_v59 = vpop.eup %4341  ;;  %v1958_v56 = vld [vmem:[%s5388_s12 + $0x8] sm:$0xff] }
 0x5a3   :  { %v1452_v60 = vmul.f32 %v4342_v59, %v5029_v23  ;;  %v1960_v59 = vld [vmem:[%s5388_s12 + $0x18] sm:$0xff] }
 0x5a4   :  { %4037 = vmatmul.mubr.msk.f32.vlgmr.msra.gmra.mrb[14].mxu1 %vm347_vm6, %v1285_v57  ;;  %v4237_v57 = vpack.c.bf16 %v1958_v56, %v1957_v55 }
 0x5a5   :  { %4045 = vmatpush3.msra.mxu1 %v1454_v58  ;;  %4046 = vmatprep.mubr.msk.f32.mxu1 %vm4616_vm5, %v4615_v46  ;;  %v1959_v58 = vld [vmem:[%s5388_s12 + $0x10] sm:$0xff] }
 0x5a6   :  { %4054 = vmatprep.subr.mxu1 %v4615_v46  ;;  %4238 = vmatprep.subr.bf16.mxu0 %v4237_v57 }
 0x5a8   :  { %4047 = vmatmul.mubr.msk.f32.vlgmr.msra.gmra.mrb[16].mxu1 %vm347_vm6, %v1452_v60  ;;  %v4241_v60 = vpack.c.bf16 %v1960_v59, %v1959_v58 }
 0x5a9   :  { %v4344_v62 = vpop.eup %4343  ;;  %4055 = vmatpush3.msra.mxu1 %v1621_v61  ;;  %4056 = vmatprep.mubr.msk.f32.mxu1 %vm4616_vm5, %v4615_v46  ;;  %v177_v61 = vld [vmem:[#allocation5] sm:$0xff] }
 0x5aa   :  { %v1619_v63 = vmul.f32 %v4344_v62, %v5034_v29  ;;  %v178_v62 = vld [vmem:[#allocation5 + $0x8] sm:$0xff] }
 0x5ac   :  { %4057 = vmatmul.mubr.msk.f32.vlgmr.msra.gmra.mrb[18].mxu1 %vm347_vm6, %v1619_v63  ;;  %v1865_v63 = vld [vmem:[%s5386_s10] sm:$0xff] }
 0x636   :  { %v507_v2 = vpop.f32.mrb[4].mxu1 }
 0x637   :  { %v3988_v3 = vpop.f32.mrb[5].mxu1 }
 0x638   :  { %v1867_v3 = vld [vmem:[%s5386_s10 + $0x10] sm:$0xff] }
 0x63a   :  { %v674_v4 = vpop.f32.mrb[6].mxu1 }
 0x63b   :  { %1013 = vrot.lane.b32.xlu0 %v674_v4, %s4606_s21  ;;  %v3998_v5 = vpop.f32.mrb[7].mxu1 }
 0x63c   :  { %v1868_v5 = vld [vmem:[%s5386_s10 + $0x18] sm:$0xff] }
 0x63d   :  { %v4233_v7 = vpack.c.bf16 %v1868_v5, %v1867_v3 }
 0x66b   :  { %v841_v9 = vpop.f32.mrb[8].mxu1 }
 0x66c   :  { %1017 = vrot.lane.b32.xlu1 %v841_v9, %s5421_s26  ;;  %v4008_v11 = vpop.f32.mrb[9].mxu1 }
 0x66f   :  { %v1008_v14 = vpop.f32.mrb[10].mxu1 }
 0x670   :  { %1021 = vrot.lane.b32.xlu1 %v1008_v14, %s4629_s14  ;;  %v4018_v16 = vpop.f32.mrb[11].mxu1 }
 0x673   :  { %v1191_v17 = vpop.f32.mrb[12].mxu1 }
 0x674   :  { %v4028_v18 = vpop.f32.mrb[13].mxu1 }
 0x677   :  { %v1358_v19 = vpop.f32.mrb[14].mxu1 }
 0x678   :  { %1697 = vrot.lane.b32.xlu0 %v1358_v19, %s4606_s21  ;;  %v4038_v50 = vpop.f32.mrb[15].mxu1 }
 0x67b   :  { %v1525_v20 = vpop.f32.mrb[16].mxu1 }
 0x67c   :  { %1701 = vrot.lane.b32.xlu0 %v1525_v20, %s5421_s26  ;;  %v4048_v21 = vpop.f32.mrb[17].mxu1 }
 0x67f   :  { %v1692_v22 = vpop.f32.mrb[18].mxu1 }
 0x680   :  { %1705 = vrot.lane.b32.xlu1 %v1692_v22, %s4629_s14  ;;  %v4058_v23 = vpop.f32.mrb[19].mxu1 }
 0x681   :  { %v3815_v23 = vld [vmem:[#allocation10 + $0x1] ss:$0 sm:$0xff] }
 0x6ad   :  { %v1014_v24 = vpop.permute.xlu0 %1013 }
 0x6ae   :  { %v1024_v26 = vsel %vm347_vm6, %v507_v2, %v1014_v24  ;;  %v1866_v2 = vld [vmem:[%s5386_s10 + $0x8] sm:$0xff]  ;;  %s3767_s10 = sshll.u32 %s4630_s16, 4  ;;  %s3768_s10 = int_to_ptr.vmem [resolvable:$true] %s3767_s10 }
 0x6af   :  { %v4229_v4 = vpack.c.bf16 %v1866_v2, %v1865_v63  ;;  %p4574_p9 = scmp.lt.s32.totalorder %s3768_s10, %s3768_s10 }
 0x6b1   :  { %4230 = vmatprep.subr.bf16.mxu1 %v4229_v4 }
 0x6b2   :  { %4232 = vmatpush3.bf16.msra.mxu1 %v4229_v4 }
 0x6b3   :  { %4234 = vmatprep.subr.bf16.mxu1 %v4233_v7 }
 0x6b6   :  { %4236 = vmatpush3.bf16.msra.mxu1 %v4233_v7 }
 0x6b7   :  { %4092 = vmatprep.subr.mxu1 %v4615_v46 }
 0x6de   :  { %v1018_v25 = vpop.permute.xlu1 %1017 }
 0x6df   :  { %v1026_v27 = vsel %vm1025_vm9, %v1024_v26, %v1018_v25  ;;  %v3816_v26 = vld [vmem:[#allocation11 + $0x1] ss:$0 sm:$0xff] }
 0x6e2   :  { %v1022_v28 = vpop.permute.xlu1 %1021 }
 0x6e3   :  { %v1028_v29 = vsel %vm1027_vm10, %v1026_v27, %v1022_v28 }
 0x6e4   :  { %4067 = vmatprep.mubr.msk.f32.mxu0 %vm193_vm0, %v1028_v29 }
 0x6ea   :  { %v1698_v30 = vpop.permute.xlu0 %1697 }
 0x6eb   :  { %v1708_v32 = vsel %vm347_vm6, %v1191_v17, %v1698_v30 }
 0x6ee   :  { %v1702_v31 = vpop.permute.xlu0 %1701 }
 0x6ef   :  { %v1709_v33 = vsel %vm1025_vm9, %v1708_v32, %v1702_v31 }
 0x6f2   :  { %v1706_v34 = vpop.permute.xlu1 %1705 }
 0x6f3   :  { %v1710_v35 = vsel %vm1027_vm10, %v1709_v33, %v1706_v34  ;;  %v3820_v33 = vld [vmem:[%s5389_s13] ss:$0 sm:$0xff] }
 0x6f4   :  { %4068 = vmatmul.mubr.msk.f32.vlgmr.msra.gmra.mrb[14].mxu0 %vm193_vm0, %v1710_v35 }
 0x6f5   :  { %4240 = vmatpush3.bf16.msra.mxu0 %v4237_v57  ;;  %4089 = vmatprep.mubr.msk.f32.mxu0 %vm193_vm0, %v177_v61  ;;  %v185_v57 = vld [vmem:[#allocation8] sm:$0xff] }
 0x6f6   :  { %4242 = vmatprep.subr.bf16.mxu0 %v4241_v60  ;;  %vm187_vm15 = vcmp.gt.f32.partialorder %v185_v57, 0.0 }
 0x6f7   :  { %v189_v59 = vsel %vm187_vm15, 0.0, %v4624_v6 }
 0x6f9   :  { %4244 = vmatpush3.bf16.msra.mxu0 %v4241_v60 }
 0x6fa   :  { %4102 = vmatprep.subr.mxu0 %v4615_v46 }
 0x6fc   :  { %4090 = vmatmul.mubr.msk.f32.vlgmr.msra.gmra.mrb[16].mxu0 %vm193_vm0, %v178_v62 }
 0x6fd   :  { %4104 = vmatprep.mubr.msk.f32.mxu0 %vm4616_vm5, %v4615_v46 }
 0x7c7   :  { %v4069_v37 = vpop.f32.mrb[14].mxu0 }
 0x7c8   :  { %v1800_v38 = vadd.f32 %v4069_v37, %v3812_v36  ;;  %v1794_v39 = vpop.f32.mrb[15].mxu0 }
 0x7c9   :  { %v1795_v40 = vadd.f32 %v3812_v36, %v1794_v39  ;;  %v3817_v39 = vld [vmem:[%s5387_s11] ss:$0 sm:$0xff] }
 0x7ca   :  { %v5104_v51 = vadd.f32 %v1800_v38, %v4887_v1 }
 0x7cb   :  { %v5107_v41 = vadd.f32 %v1795_v40, %v4885_v0 }
 0x7cc   :  { %v1812_v42 = vsel %vm193_vm0, %v5104_v51, 0.0 }
 0x7cd   :  { %1813 = vadd.xlane.f32.xlu1 %v1812_v42  ;;  %v1809_v43 = vsel %vm193_vm0, %v5107_v41, 0.0 }
 0x7ce   :  { %1810 = vadd.xlane.f32.xlu0 %v1809_v43 }
 0x7cf   :  { %v4091_v34 = vpop.f32.mrb[16].mxu0 }
 0x7d0   :  { %v2040_v35 = vpop.f32.mrb[17].mxu0  ;;  %v5168_v37 = vadd.f32 %v4091_v34, %v3820_v33 }
 0x7d1   :  { %v5159_v36 = vadd.f32 %v3820_v33, %v2040_v35 }
 0x7de   :  { %2383 = vrot.lane.b32.xlu1 %v5159_v36, %s4620_s28 }
 0x85a   :  { %v1814_v44 = vpop.xlane.xlu1 %1813 }
 0x85b   :  { %v1816_v45 = vmul.f32 0.03125, %v1814_v44  ;;  %v1811_v47 = vpop.xlane.xlu0 %1810 }
 0x85c   :  { %v1815_v48 = vmul.f32 0.03125, %v1811_v47 }
 0x85d   :  { %v5114_v49 = vsub.f32 %v5104_v51, %v1816_v45 }
 0x85e   :  { %v1817_v1 = vsub.f32 %v5107_v41, %v1815_v48  ;;  %v2384_v45 = vpop.permute.xlu1 %2383 }
 0x85f   :  { %v1820_v53 = vmul.f32 %v5114_v49, %v5114_v49  ;;  %v1836_v28 = vmul.f32 %v3815_v23, %v5114_v49 }
 0x860   :  { %v1819_v52 = vmul.f32 %v1817_v1, %v1817_v1  ;;  %v1835_v24 = vmul.f32 %v3815_v23, %v1817_v1 }
 0x861   :  { %v1824_v54 = vsel %vm193_vm0, %v1820_v53, 0.0 }
 0x862   :  { %v1821_v0 = vsel %vm193_vm0, %v1819_v52, 0.0 }
 0x863   :  { %1822 = vadd.xlane.f32.xlu0 %v1821_v0 }
 0x867   :  { %1825 = vadd.xlane.f32.xlu0 %v1824_v54 }
 0x87d   :  { %2216 = vrot.lane.b32.xlu0 %v5159_v36, %s4619_s19 }
 0x881   :  { %2550 = vrot.lane.b32.xlu0 %v5159_v36, %s4622_s4 }
 0x885   :  { %2897 = vrot.lane.b32.xlu0 %v5168_v37, %s4619_s19 }
 0x889   :  { %3064 = vrot.lane.b32.xlu0 %v5168_v37, %s4620_s28 }
 0x88d   :  { %3231 = vrot.lane.b32.xlu0 %v5168_v37, %s4622_s4 }
 0x8f0   :  { %v1823_v8 = vpop.xlane.xlu0 %1822 }
 0x8f1   :  { %v1827_v9 = vmul.f32 0.032258064, %v1823_v8 }
 0x8f3   :  { %4345 = vrsqrt.f32 %v1827_v9  ;;  %vm1839_vm11 = vcmp.eq.f32.partialorder %v1827_v9, inf  ;;  %v1842_v14 = vand.u32 2147483648, %v1827_v9  ;;  %vm1841_vm12 = vcmp.eq.f32.partialorder %v1827_v9, 0.0 }
 0x8f4   :  { %v1826_v10 = vpop.xlane.xlu0 %1825 }
 0x8f5   :  { %v1828_v11 = vmul.f32 0.032258064, %v1826_v10 }
 0x8f7   :  { %4347 = vrsqrt.f32 %v1828_v11  ;;  %vm1846_vm13 = vcmp.eq.f32.partialorder %v1828_v11, inf  ;;  %v1849_v50 = vand.u32 2147483648, %v1828_v11  ;;  %vm1848_vm14 = vcmp.eq.f32.partialorder %v1828_v11, 0.0 }
 0x8f8   :  { %v2217_v38 = vpop.permute.xlu0 %2216 }
 0x8f9   :  { %4103 = vmatpush3.xpose.msk.msra.mxu0 %vm347_vm6, %v2217_v38 }
 0x8fa   :  { %4112 = vmatprep.subr.mxu0 %v4615_v46 }
 0x8fc   :  { %v2551_v48 = vpop.permute.xlu0 %2550 }
 0x8fd   :  { %v4346_v12 = vpop.eup %4345 }
 0x8fe   :  { %v1838_v13 = vmul.f32 %v4346_v12, %v1827_v9 }
 0x900   :  { %v1840_v15 = vsel %vm1839_vm11, %v1827_v9, %v1838_v13  ;;  %v2898_v52 = vpop.permute.xlu0 %2897 }
 0x901   :  { %v4348_v16 = vpop.eup %4347  ;;  %v1843_v17 = vsel %vm1841_vm12, %v1842_v14, %v1840_v15 }
 0x902   :  { %v1845_v18 = vmul.f32 %v4348_v16, %v1828_v11  ;;  %v1851_v19 = vadd.f32 1e-06, %v1843_v17 }
 0x904   :  { %v1847_v20 = vsel %vm1846_vm13, %v1828_v11, %v1845_v18  ;;  %4349 = vrcp.f32 %v1851_v19  ;;  %v3065_v53 = vpop.permute.xlu0 %3064  ;;  %v186_v11 = vld [vmem:[#allocation8 + $0x8] sm:$0xff] }
 0x905   :  { %v1850_v21 = vsel %vm1848_vm14, %v1849_v50, %v1847_v20  ;;  %vm188_vm1 = vcmp.gt.f32.partialorder %v186_v11, 0.0 }
 0x906   :  { %v1852_v22 = vadd.f32 1e-06, %v1850_v21  ;;  %v190_v19 = vsel %vm188_vm1, 0.0, %v4624_v6 }
 0x908   :  { %4351 = vrcp.f32 %v1852_v22  ;;  %v3232_v55 = vpop.permute.xlu0 %3231 }
 0x90e   :  { %v4350_v25 = vpop.eup %4349 }
 0x90f   :  { %v1854_v27 = vmul.f32 %v4350_v25, %v1835_v24 }
 0x911   :  { %v1863_v29 = vadd.f32 %v3816_v26, %v1854_v27 }
 0x912   :  { %v4352_v30 = vpop.eup %4351 }
 0x913   :  { %v1856_v31 = vmul.f32 %v4352_v30, %v1836_v28  ;;  %4078 = vmatprep.mubr.msk.f32.mxu1 %vm193_vm0, %v1863_v29 }
 0x915   :  { %v1864_v32 = vadd.f32 %v3816_v26, %v1856_v31 }
 0x917   :  { %4079 = vmatmul.mubr.msk.f32.vlgmr.msra.gmra.mrb[20].mxu1 %vm193_vm0, %v1864_v32 }
 0x918   :  { %4094 = vmatprep.mubr.msk.f32.mxu1 %vm4616_vm5, %v4615_v46  ;;  %4093 = vmatpush3.xpose.msk.msra.mxu1 %vm347_vm6, %v5159_v36 }
 0x919   :  { %4097 = vmatprep.subr.mxu1 %v4615_v46 }
 0x9ea   :  { %v4080_v40 = vpop.f32.mrb[20].mxu1 }
 0x9eb   :  { %v1948_v42 = vpop.f32.mrb[21].mxu1  ;;  %v1954_v44 = vadd.f32 %v4080_v40, %v3817_v39 }
 0x9ec   :  { %v1949_v43 = vadd.f32 %v3817_v39, %v1948_v42 }
 0x9ee   :  { %2214 = vrot.lane.b32.xlu1 %v1949_v43, %s4619_s19  ;;  %4095 = vmatmul.mubr.msk.f32.vlgmr.msra.gmra.mrb[22].mxu1 %vm347_vm6, %v1949_v43 }
 0x9ef   :  { %4099 = vmatprep.mubr.msk.f32.mxu1 %vm4616_vm5, %v4615_v46 }
 0x9f2   :  { %2381 = vrot.lane.b32.xlu1 %v1949_v43, %s4620_s28 }
 0x9f6   :  { %2548 = vrot.lane.b32.xlu1 %v1949_v43, %s4622_s4 }
 0x9fa   :  { %2895 = vrot.lane.b32.xlu1 %v1954_v44, %s4619_s19 }
 0x9fe   :  { %3062 = vrot.lane.b32.xlu1 %v1954_v44, %s4620_s28 }
 0xa02   :  { %3229 = vrot.lane.b32.xlu1 %v1954_v44, %s4622_s4 }
 0xa60   :  { %v2215_v47 = vpop.permute.xlu1 %2214 }
 0xa61   :  { %4105 = vmatmul.mubr.msk.f32.vlgmr.msra.gmra.mrb[18].mxu0 %vm347_vm6, %v2215_v47 }
 0xa62   :  { %4113 = vmatpush3.xpose.msk.msra.mxu0 %vm347_vm6, %v2384_v45  ;;  %4114 = vmatprep.mubr.msk.f32.mxu0 %vm4616_vm5, %v4615_v46 }
 0xa63   :  { %4122 = vmatprep.subr.mxu0 %v4615_v46 }
 0xa64   :  { %v2382_v49 = vpop.permute.xlu1 %2381 }
 0xa65   :  { %4115 = vmatmul.mubr.msk.f32.vlgmr.msra.gmra.mrb[20].mxu0 %vm347_vm6, %v2382_v49 }
 0xa66   :  { %4123 = vmatpush3.xpose.msk.msra.mxu0 %vm347_vm6, %v2551_v48  ;;  %4124 = vmatprep.mubr.msk.f32.mxu0 %vm4616_vm5, %v4615_v46 }
 0xa67   :  { %4132 = vmatprep.subr.mxu0 %v4615_v46 }
 0xa68   :  { %v2549_v1 = vpop.permute.xlu1 %2548 }
 0xa69   :  { %4125 = vmatmul.mubr.msk.f32.vlgmr.msra.gmra.mrb[22].mxu0 %vm347_vm6, %v2549_v1 }
 0xa6a   :  { %4133 = vmatpush3.xpose.msk.msra.mxu0 %vm347_vm6, %v5168_v37  ;;  %4134 = vmatprep.mubr.msk.f32.mxu0 %vm4616_vm5, %v4615_v46 }
 0xa6b   :  { %4142 = vmatprep.subr.mxu0 %v4615_v46 }
 0xa6c   :  { %v2896_v0 = vpop.permute.xlu1 %2895 }
 0xa6d   :  { %4135 = vmatmul.mubr.msk.f32.vlgmr.msra.gmra.mrb[24].mxu0 %vm347_vm6, %v1954_v44 }
 0xa6e   :  { %4143 = vmatpush3.xpose.msk.msra.mxu0 %vm347_vm6, %v2898_v52  ;;  %4144 = vmatprep.mubr.msk.f32.mxu0 %vm4616_vm5, %v4615_v46 }
 0xa6f   :  { %4152 = vmatprep.subr.mxu0 %v4615_v46 }
 0xa70   :  { %v3063_v54 = vpop.permute.xlu1 %3062 }
 0xa71   :  { %4145 = vmatmul.mubr.msk.f32.vlgmr.msra.gmra.mrb[26].mxu0 %vm347_vm6, %v2896_v0 }
 0xa72   :  { %4153 = vmatpush3.xpose.msk.msra.mxu0 %vm347_vm6, %v3065_v53  ;;  %4154 = vmatprep.mubr.msk.f32.mxu0 %vm4616_vm5, %v4615_v46 }
 0xa73   :  { %4162 = vmatprep.subr.mxu0 %v4615_v46 }
 0xa74   :  { %v3230_v56 = vpop.permute.xlu1 %3229 }
 0xa75   :  { %4155 = vmatmul.mubr.msk.f32.vlgmr.msra.gmra.mrb[28].mxu0 %vm347_vm6, %v3063_v54 }
 0xa76   :  { %4163 = vmatpush3.xpose.msk.msra.mxu0 %vm347_vm6, %v3232_v55  ;;  %4164 = vmatprep.mubr.msk.f32.mxu0 %vm4616_vm5, %v4615_v46 }
 0xa79   :  { %4165 = vmatmul.mubr.msk.f32.vlgmr.msra.gmra.mrb[30].mxu0 %vm347_vm6, %v3230_v56 }
 0xac1   :  { %v2121_v58 = vpop.f32.mrb[22].mxu1 }
 0xac2   :  { %v2125_v60 = vmul.f32 0.35355338, %v2121_v58  ;;  %v4096_v61 = vpop.f32.mrb[23].mxu1 }
 0xac4   :  { %v2126_v62 = vadd.f32 %v2125_v60, %v189_v59 }
 0xac6   :  { %v2127_v63 = vsel %vm347_vm6, %v2126_v62, -inf }
 0xac7   :  { %2128 = vmax.xlane.f32.xlu0 %v2127_v63 }
 0xb34   :  { %v2288_v2 = vpop.f32.mrb[18].mxu0 }
 0xb35   :  { %v2292_v3 = vmul.f32 0.35355338, %v2288_v2  ;;  %v4106_v4 = vpop.f32.mrb[19].mxu0 }
 0xb37   :  { %v2293_v5 = vadd.f32 %v2292_v3, %v189_v59 }
 0xb38   :  { %v2455_v7 = vpop.f32.mrb[20].mxu0 }
 0xb39   :  { %v2459_v8 = vmul.f32 0.35355338, %v2455_v7  ;;  %v4116_v9 = vpop.f32.mrb[21].mxu0  ;;  %v2294_v10 = vsel %vm347_vm6, %v2293_v5, -inf }
 0xb3a   :  { %2295 = vmax.xlane.f32.xlu1 %v2294_v10 }
 0xb3b   :  { %v2460_v12 = vadd.f32 %v2459_v8, %v189_v59 }
 0xb3c   :  { %v2622_v13 = vpop.f32.mrb[22].mxu0 }
 0xb3d   :  { %v2626_v14 = vmul.f32 0.35355338, %v2622_v13  ;;  %v4126_v15 = vpop.f32.mrb[23].mxu0  ;;  %v2461_v16 = vsel %vm347_vm6, %v2460_v12, -inf }
 0xb3e   :  { %2462 = vmax.xlane.f32.xlu0 %v2461_v16 }
 0xb3f   :  { %v2627_v17 = vadd.f32 %v2626_v14, %v189_v59 }
 0xb40   :  { %v2802_v18 = vpop.f32.mrb[24].mxu0 }
 0xb41   :  { %v2806_v50 = vmul.f32 0.35355338, %v2802_v18  ;;  %v4136_v20 = vpop.f32.mrb[25].mxu0  ;;  %v2628_v21 = vsel %vm347_vm6, %v2627_v17, -inf }
 0xb42   :  { %2629 = vmax.xlane.f32.xlu0 %v2628_v21 }
 0xb43   :  { %v2807_v22 = vadd.f32 %v2806_v50, %v190_v19 }
 0xb44   :  { %v2969_v23 = vpop.f32.mrb[26].mxu0 }
 0xb45   :  { %v2973_v24 = vmul.f32 0.35355338, %v2969_v23  ;;  %v4146_v25 = vpop.f32.mrb[27].mxu0  ;;  %v2808_v26 = vsel %vm347_vm6, %v2807_v22, -inf }
 0xb46   :  { %2809 = vmax.xlane.f32.xlu0 %v2808_v26 }
 0xb47   :  { %v5230_v27 = vadd.f32 %v2973_v24, %v190_v19 }
 0xb48   :  { %v3136_v28 = vpop.f32.mrb[28].mxu0 }
 0xb49   :  { %v3140_v29 = vmul.f32 0.35355338, %v3136_v28  ;;  %v4156_v30 = vpop.f32.mrb[29].mxu0  ;;  %v2975_v6 = vsel %vm347_vm6, %v5230_v27, -inf }
 0xb4a   :  { %2976 = vmax.xlane.f32.xlu1 %v2975_v6 }
 0xb4b   :  { %v3141_v31 = vadd.f32 %v3140_v29, %v190_v19 }
 0xb4c   :  { %v3303_v32 = vpop.f32.mrb[30].mxu0 }
 0xb4d   :  { %v4166_v33 = vpop.f32.mrb[31].mxu0  ;;  %v3142_v34 = vsel %vm347_vm6, %v3141_v31, -inf  ;;  %v3307_v43 = vmul.f32 0.35355338, %v3303_v32 }
 0xb4e   :  { %3143 = vmax.xlane.f32.xlu0 %v3142_v34 }
 0xb4f   :  { %v3308_v44 = vadd.f32 %v3307_v43, %v190_v19 }
 0xb51   :  { %v3309_v45 = vsel %vm347_vm6, %v3308_v44, -inf }
 0xb54   :  { %v2129_v35 = vpop.xlane.xlu0 %2128 }
 0xb55   :  { %v2130_v38 = vsub.f32 %v2126_v62, %v2129_v35 }
 0xb57   :  { %v2131_v39 = vmul.f32 1.442695, %v2130_v38 }
 0xb59   :  { %4353 = vpow2.f32 %v2131_v39 }
 0xb5b   :  { %2138 = vrot.lane.b32.xlu1 %v5159_v36, %s4618_s1 }
 0xb63   :  { %v4354_v40 = vpop.eup %4353 }
 0xb64   :  { %v2133_v42 = vsel %vm347_vm6, %v4354_v40, 0.0 }
 0xb65   :  { %2134 = vadd.xlane.f32.xlu0 %v2133_v42 }
 0xb7b   :  { %2305 = vrot.lane.b32.xlu0 %v5159_v36, %s4617_s0 }
 0xb7f   :  { %3310 = vmax.xlane.f32.xlu1 %v3309_v45 }
 0xb90   :  { %2472 = vrot.lane.b32.xlu1 %v5159_v36, %s4621_s7 }
 0xb94   :  { %2639 = vrot.lane.b32.xlu1 %v5159_v36, %s4623_s30 }
 0xb98   :  { %2819 = vrot.lane.b32.xlu1 %v5168_v37, %s4618_s1 }
 0xbc7   :  { %v2296_v47 = vpop.xlane.xlu1 %2295 }
 0xbc8   :  { %v2297_v48 = vsub.f32 %v2293_v5, %v2296_v47 }
 0xbca   :  { %v2298_v49 = vmul.f32 1.442695, %v2297_v48 }
 0xbcb   :  { %v2463_v1 = vpop.xlane.xlu0 %2462 }
 0xbcc   :  { %4355 = vpow2.f32 %v2298_v49  ;;  %v2464_v52 = vsub.f32 %v2460_v12, %v2463_v1 }
 0xbce   :  { %v2465_v0 = vmul.f32 1.442695, %v2464_v52 }
 0xbcf   :  { %v2630_v53 = vpop.xlane.xlu0 %2629 }
 0xbd0   :  { %4357 = vpow2.f32 %v2465_v0  ;;  %v2631_v54 = vsub.f32 %v2627_v17, %v2630_v53 }
 0xbd2   :  { %v2632_v55 = vmul.f32 1.442695, %v2631_v54 }
 0xbd3   :  { %v2810_v56 = vpop.xlane.xlu0 %2809 }
 0xbd4   :  { %4359 = vpow2.f32 %v2632_v55  ;;  %v2811_v57 = vsub.f32 %v2807_v22, %v2810_v56 }
 0xbd6   :  { %v4356_v58 = vpop.eup %4355  ;;  %v2812_v59 = vmul.f32 1.442695, %v2811_v57 }
 0xbd7   :  { %v2977_v36 = vpop.xlane.xlu1 %2976  ;;  %v2300_v60 = vsel %vm347_vm6, %v4356_v58, 0.0 }
 0xbd8   :  { %4361 = vpow2.f32 %v2812_v59  ;;  %2301 = vadd.xlane.f32.xlu1 %v2300_v60  ;;  %v2978_v15 = vsub.f32 %v5230_v27, %v2977_v36 }
 0xbda   :  { %v4358_v61 = vpop.eup %4357  ;;  %v2979_v17 = vmul.f32 1.442695, %v2978_v15 }
 0xbdb   :  { %v2139_v62 = vpop.permute.xlu1 %2138  ;;  %v3144_v63 = vpop.xlane.xlu0 %3143  ;;  %v2467_v2 = vsel %vm347_vm6, %v4358_v61, 0.0 }
 0xbdc   :  { %v3145_v3 = vsub.f32 %v3141_v31, %v3144_v63  ;;  %4098 = vmatpush3.msra.mxu1 %v2139_v62  ;;  %2468 = vadd.xlane.f32.xlu0 %v2467_v2  ;;  %v3412_v62 = vld [vmem:[#allocation13 + $0x8] sm:$0xff]  ;;  %v3413_v2 = vld [vmem:[#allocation13 + $0x10] sm:$0xff] }
 0xbdd   :  { %4107 = vmatprep.subr.mxu1 %v4615_v46 }
 0xbde   :  { %v4360_v4 = vpop.eup %4359  ;;  %v3146_v5 = vmul.f32 1.442695, %v3145_v3  ;;  %v3414_v3 = vld [vmem:[#allocation13 + $0x18] sm:$0xff] }
 0xbdf   :  { %v2634_v7 = vsel %vm347_vm6, %v4360_v4, 0.0 }
 0xbe0   :  { %4363 = vpow2.f32 %v3146_v5  ;;  %2635 = vadd.xlane.f32.xlu1 %v2634_v7 }
 0xbe2   :  { %v4362_v8 = vpop.eup %4361 }
 0xbe3   :  { %v2814_v9 = vsel %vm347_vm6, %v4362_v8, 0.0 }
 0xbe4   :  { %2815 = vadd.xlane.f32.xlu0 %v2814_v9 }
 0xbea   :  { %v5252_v10 = vpop.eup %4363 }
 0xbeb   :  { %v3148_v11 = vsel %vm347_vm6, %v5252_v10, 0.0 }
 0xbec   :  { %3149 = vadd.xlane.f32.xlu0 %v3148_v11 }
 0xbf1   :  { %2986 = vrot.lane.b32.xlu1 %v5168_v37, %s4617_s0 }
 0xbf2   :  { %v2135_v12 = vpop.xlane.xlu0 %2134 }
 0xbf3   :  { %4365 = vrcp.f32 %v2135_v12 }
 0xbf4   :  { %4367 = vpow2.f32 %v2979_v17 }
 0xbf6   :  { %v2306_v16 = vpop.permute.xlu0 %2305 }
 0xbfd   :  { %v4366_v13 = vpop.eup %4365 }
 0xbfe   :  { %v2137_v14 = vmul.f32 %v4366_v13, %v4354_v40  ;;  %v4368_v20 = vpop.eup %4367 }
 0xbff   :  { %v2981_v21 = vsel %vm347_vm6, %v4368_v20, 0.0 }
 0xc00   :  { %4100 = vmatmul.mubr.msk.f32.vlgmr.msra.gmra.mrb[24].mxu1 %vm347_vm6, %v2137_v14 }
 0xc01   :  { %4108 = vmatpush3.msra.mxu1 %v2306_v16  ;;  %4109 = vmatprep.mubr.msk.f32.mxu1 %vm4616_vm5, %v4615_v46 }
 0xc02   :  { %4117 = vmatprep.subr.mxu1 %v4615_v46 }
 0xc0c   :  { %v3311_v18 = vpop.xlane.xlu1 %3310 }
 0xc0d   :  { %v3312_v19 = vsub.f32 %v3308_v44, %v3311_v18 }
 0xc0f   :  { %v3313_v50 = vmul.f32 1.442695, %v3312_v19 }
 0xc10   :  { %v2473_v24 = vpop.permute.xlu1 %2472 }
 0xc11   :  { %4369 = vpow2.f32 %v3313_v50 }
 0xc14   :  { %v2640_v25 = vpop.permute.xlu1 %2639 }
 0xc15   :  { %2982 = vadd.xlane.f32.xlu1 %v2981_v21 }
 0xc18   :  { %v2820_v26 = vpop.permute.xlu1 %2819 }
 0xc1b   :  { %v4370_v22 = vpop.eup %4369 }
 0xc1c   :  { %v3315_v23 = vsel %vm347_vm6, %v4370_v22, 0.0 }
 0xc1d   :  { %3316 = vadd.xlane.f32.xlu0 %v3315_v23  ;;  %v3847_v23 = vld [vmem:[%s5391_s15] ss:$0 sm:$0xff] }
 0xc26   :  { %3320 = vrot.lane.b32.xlu1 %v5168_v37, %s4623_s30 }
 0xc33   :  { %3153 = vrot.lane.b32.xlu0 %v5168_v37, %s4621_s7 }
 0xc65   :  { %v2302_v27 = vpop.xlane.xlu1 %2301 }
 0xc66   :  { %4371 = vrcp.f32 %v2302_v27 }
 0xc69   :  { %v2469_v28 = vpop.xlane.xlu0 %2468 }
 0xc6a   :  { %4373 = vrcp.f32 %v2469_v28 }
 0xc6d   :  { %v2636_v29 = vpop.xlane.xlu1 %2635 }
 0xc6e   :  { %4375 = vrcp.f32 %v2636_v29 }
 0xc70   :  { %v4372_v30 = vpop.eup %4371 }
 0xc71   :  { %v2304_v6 = vmul.f32 %v4372_v30, %v4356_v58  ;;  %v2816_v31 = vpop.xlane.xlu0 %2815  ;;  %v2987_v39 = vpop.permute.xlu1 %2986 }
 0xc72   :  { %4377 = vrcp.f32 %v2816_v31 }
 0xc73   :  { %4110 = vmatmul.mubr.msk.f32.vlgmr.msra.gmra.mrb[26].mxu1 %vm347_vm6, %v2304_v6 }
 0xc74   :  { %v4374_v32 = vpop.eup %4373  ;;  %4118 = vmatpush3.msra.mxu1 %v2473_v24  ;;  %4119 = vmatprep.mubr.msk.f32.mxu1 %vm4616_vm5, %v4615_v46 }
 0xc75   :  { %v2471_v37 = vmul.f32 %v4374_v32, %v4358_v61  ;;  %4127 = vmatprep.subr.mxu1 %v4615_v46 }
 0xc77   :  { %4120 = vmatmul.mubr.msk.f32.vlgmr.msra.gmra.mrb[28].mxu1 %vm347_vm6, %v2471_v37 }
 0xc78   :  { %v4376_v33 = vpop.eup %4375  ;;  %4128 = vmatpush3.msra.mxu1 %v2640_v25  ;;  %4129 = vmatprep.mubr.msk.f32.mxu1 %vm4616_vm5, %v4615_v46 }
 0xc79   :  { %v2638_v34 = vmul.f32 %v4376_v33, %v4360_v4  ;;  %4137 = vmatprep.subr.mxu1 %v4615_v46  ;;  %v3150_v40 = vpop.xlane.xlu0 %3149  ;;  %v4249_v4 = vpack.c.bf16 %v3414_v3, %v3413_v2 }
 0xc7b   :  { %4130 = vmatmul.mubr.msk.f32.vlgmr.msra.gmra.mrb[30].mxu1 %vm347_vm6, %v2638_v34 }
 0xc7c   :  { %v4378_v35 = vpop.eup %4377  ;;  %4138 = vmatpush3.msra.mxu1 %v2820_v26  ;;  %4139 = vmatprep.mubr.msk.f32.mxu1 %vm4616_vm5, %v4615_v46 }
 0xc7d   :  { %v2818_v38 = vmul.f32 %v4378_v35, %v4362_v8  ;;  %4147 = vmatprep.subr.mxu1 %v4615_v46 }
 0xc7f   :  { %4140 = vmatmul.mubr.msk.f32.vlgmr.msra.gmra.mrb[32].mxu1 %vm347_vm6, %v2818_v38 }
 0xc80   :  { %4148 = vmatpush3.msra.mxu1 %v2987_v39  ;;  %4149 = vmatprep.mubr.msk.f32.mxu1 %vm4616_vm5, %v4615_v46 }
 0xc81   :  { %4157 = vmatprep.subr.mxu1 %v4615_v46 }
 0xca2   :  { %v2983_v42 = vpop.xlane.xlu1 %2982 }
 0xca3   :  { %4379 = vrcp.f32 %v2983_v42  ;;  %v3566_v42 = vld [vmem:[#allocation14 + $0x8] sm:$0xff] }
 0xca4   :  { %4381 = vrcp.f32 %v3150_v40  ;;  %v3565_v40 = vld [vmem:[#allocation14] sm:$0xff] }
 0xca6   :  { %v3321_v1 = vpop.permute.xlu1 %3320 }
 0xcaa   :  { %v3317_v43 = vpop.xlane.xlu0 %3316 }
 0xcab   :  { %4383 = vrcp.f32 %v3317_v43  ;;  %v3567_v43 = vld [vmem:[#allocation14 + $0x10] sm:$0xff] }
 0xcad   :  { %v4380_v44 = vpop.eup %4379 }
 0xcae   :  { %v2985_v45 = vmul.f32 %v4380_v44, %v4368_v20  ;;  %v3154_v47 = vpop.permute.xlu0 %3153  ;;  %v4382_v48 = vpop.eup %4381  ;;  %v4253_v44 = vpack.c.bf16 %v3566_v42, %v3565_v40 }
 0xcaf   :  { %v3152_v49 = vmul.f32 %v4382_v48, %v5252_v10  ;;  %v3659_v48 = vld [vmem:[%s5394_s18] sm:$0xff] }
 0xcb0   :  { %4150 = vmatmul.mubr.msk.f32.vlgmr.msra.gmra.mrb[34].mxu1 %vm347_vm6, %v2985_v45  ;;  %v3568_v45 = vld [vmem:[#allocation14 + $0x18] sm:$0xff] }
 0xcb1   :  { %4158 = vmatpush3.msra.mxu1 %v3154_v47  ;;  %4159 = vmatprep.mubr.msk.f32.mxu1 %vm4616_vm5, %v4615_v46  ;;  %v4257_v47 = vpack.c.bf16 %v3568_v45, %v3567_v43 }
 0xcb2   :  { %4167 = vmatprep.subr.mxu1 %v4615_v46 }
 0xcb4   :  { %4160 = vmatmul.mubr.msk.f32.vlgmr.msra.gmra.mrb[36].mxu1 %vm347_vm6, %v3152_v49  ;;  %v3660_v49 = vld [vmem:[%s5394_s18 + $0x8] sm:$0xff] }
 0xcb5   :  { %v4384_v52 = vpop.eup %4383  ;;  %4168 = vmatpush3.msra.mxu1 %v3321_v1  ;;  %4169 = vmatprep.mubr.msk.f32.mxu1 %vm4616_vm5, %v4615_v46  ;;  %v3411_v46 = vld [vmem:[#allocation13] sm:$0xff]  ;;  %v3661_v1 = vld [vmem:[%s5394_s18 + $0x10] sm:$0xff] }
 0xcb6   :  { %v3319_v0 = vmul.f32 %v4384_v52, %v4370_v22  ;;  %v4245_v63 = vpack.c.bf16 %v3412_v62, %v3411_v46  ;;  %4254 = vmatprep.subr.bf16.mxu1 %v4253_v44  ;;  %v4261_v52 = vpack.c.bf16 %v3660_v49, %v3659_v48 }
 0xcb8   :  { %4170 = vmatmul.mubr.msk.f32.vlgmr.msra.gmra.mrb[38].mxu1 %vm347_vm6, %v3319_v0  ;;  %4246 = vmatprep.subr.bf16.mxu0 %v4245_v63  ;;  %v3662_v0 = vld [vmem:[%s5394_s18 + $0x18] sm:$0xff] }
 0xcb9   :  { %4248 = vmatpush3.bf16.msra.mxu0 %v4245_v63  ;;  %4256 = vmatpush3.bf16.msra.mxu1 %v4253_v44 }
 0xcba   :  { %4250 = vmatprep.subr.bf16.mxu0 %v4249_v4  ;;  %4258 = vmatprep.subr.bf16.mxu1 %v4257_v47 }
 0xcbd   :  { %4252 = vmatpush3.bf16.msra.mxu0 %v4249_v4  ;;  %4260 = vmatpush3.bf16.msra.mxu1 %v4257_v47 }
 0xcbe   :  { %4262 = vmatprep.subr.bf16.mxu0 %v4261_v52 }
 0xcd3   :  { %v2210_v53 = vpop.f32.mrb[24].mxu1 }
 0xcd4   :  { %v4101_v54 = vpop.f32.mrb[25].mxu1 }
 0xcd5   :  { %v3663_v54 = vld [vmem:[%s5394_s18 + $0x20] sm:$0xff] }
 0xd46   :  { %v2377_v55 = vpop.f32.mrb[26].mxu1 }
 0xd47   :  { %2716 = vrot.lane.b32.xlu0 %v2377_v55, %s4606_s21  ;;  %v4111_v56 = vpop.f32.mrb[27].mxu1  ;;  %v3664_v55 = vld [vmem:[%s5394_s18 + $0x28] sm:$0xff] }
 0xd48   :  { %v4269_v56 = vpack.c.bf16 %v3664_v55, %v3663_v54 }
 0xd4a   :  { %v2544_v57 = vpop.f32.mrb[28].mxu1 }
 0xd4b   :  { %2720 = vrot.lane.b32.xlu1 %v2544_v57, %s5421_s26  ;;  %v4121_v58 = vpop.f32.mrb[29].mxu1 }
 0xd4e   :  { %v2711_v59 = vpop.f32.mrb[30].mxu1 }
 0xd4f   :  { %2724 = vrot.lane.b32.xlu1 %v2711_v59, %s4629_s14  ;;  %v4131_v36 = vpop.f32.mrb[31].mxu1 }
 0xd52   :  { %v2891_v60 = vpop.f32.mrb[32].mxu1 }
 0xd53   :  { %v4141_v61 = vpop.f32.mrb[33].mxu1 }
 0xd83   :  { %v3058_v5 = vpop.f32.mrb[34].mxu1 }
 0xd84   :  { %3397 = vrot.lane.b32.xlu0 %v3058_v5, %s4606_s21  ;;  %v4151_v7 = vpop.f32.mrb[35].mxu1 }
 0xd87   :  { %v3225_v8 = vpop.f32.mrb[36].mxu1 }
 0xd88   :  { %3401 = vrot.lane.b32.xlu0 %v3225_v8, %s5421_s26  ;;  %v4161_v9 = vpop.f32.mrb[37].mxu1 }
 0xd8b   :  { %v3392_v10 = vpop.f32.mrb[38].mxu1 }
 0xd8c   :  { %3405 = vrot.lane.b32.xlu1 %v3392_v10, %s4629_s14  ;;  %v4171_v11 = vpop.f32.mrb[39].mxu1  ;;  %v3850_v10 = vld [vmem:[#allocation10 + $0x2] ss:$0 sm:$0xff] }
 0xdb9   :  { %v2717_v12 = vpop.permute.xlu0 %2716 }
 0xdba   :  { %v2727_v14 = vsel %vm347_vm6, %v2210_v53, %v2717_v12  ;;  %v4265_v53 = vpack.c.bf16 %v3662_v0, %v3661_v1 }
 0xdbd   :  { %v2721_v13 = vpop.permute.xlu1 %2720 }
 0xdbe   :  { %v2728_v15 = vsel %vm1025_vm9, %v2727_v14, %v2721_v13  ;;  %v3851_v13 = vld [vmem:[#allocation11 + $0x2] ss:$0 sm:$0xff] }
 0xdc1   :  { %v2725_v16 = vpop.permute.xlu1 %2724 }
 0xdc2   :  { %v2729_v17 = vsel %vm1027_vm10, %v2728_v15, %v2725_v16 }
 0xdc3   :  { %4180 = vmatprep.mubr.msk.f32.mxu0 %vm193_vm0, %v2729_v17 }
 0xdf6   :  { %v3398_v18 = vpop.permute.xlu0 %3397 }
 0xdf7   :  { %v3408_v50 = vsel %vm347_vm6, %v2891_v60, %v3398_v18  ;;  %vm3667_vm6 = vcmask 523264  }
 0xdfa   :  { %v3402_v19 = vpop.permute.xlu0 %3401 }
 0xdfb   :  { %v3409_v20 = vsel %vm1025_vm9, %v3408_v50, %v3402_v19  ;;  %v3665_v50 = vld [vmem:[%s5394_s18 + $0x30] sm:$0xff] }
 0xdfe   :  { %v3406_v21 = vpop.permute.xlu1 %3405 }
 0xdff   :  { %v3410_v22 = vsel %vm1027_vm10, %v3409_v20, %v3406_v21  ;;  %v3666_v20 = vld [vmem:[%s5394_s18 + $0x38] sm:$0xff]  ;;  %s5423_s18 = sld [smem:[#allocation28_spill]] }
 0xe00   :  { %4181 = vmatmul.mubr.msk.f32.vlgmr.msra.gmra.mrb[32].mxu0 %vm193_vm0, %v3410_v22  ;;  %v4273_v21 = vpack.c.bf16 %v3666_v20, %v3665_v50  ;;  %v3852_v22 = vld [vmem:[%s5393_s17] ss:$0 sm:$0xff]  ;;  %s4569_s17 = scalar_lea.vmem %s3768_s10, 256 }
 0xe01   :  { %4264 = vmatpush3.bf16.msra.mxu0 %v4261_v52  ;;  %p4570_p8 = scmp.ne.s32.totalorder %s3768_s10, %s4569_s17  ;;  %p4575_p10 = scmp.lt.s32.totalorder %s4569_s17, %s4569_s17 }
 0xe02   :  { %4266 = vmatprep.subr.bf16.mxu0 %v4265_v53 }
 0xe03   :  { %p4576_p11 = por %p4575_p10, %p4574_p9 }
 0xe05   :  { %4268 = vmatpush3.bf16.msra.mxu0 %v4265_v53  ;;  %p4577_p12 = pnand %p4576_p11, %p4570_p8 }
 0xe06   :  { %4270 = vmatprep.subr.bf16.mxu0 %v4269_v56 }
 0xe09   :  { %4272 = vmatpush3.bf16.msra.mxu0 %v4269_v56 }
 0xe0a   :  { %4274 = vmatprep.subr.bf16.mxu0 %v4273_v21 }
 0xe0d   :  { %4276 = vmatpush3.bf16.msra.mxu0 %v4273_v21 }
 0xed3   :  { %v4182_v24 = vpop.f32.mrb[32].mxu0 }
 0xed4   :  { %v3500_v25 = vadd.f32 %v4182_v24, %v3847_v23  ;;  %v3494_v26 = vpop.f32.mrb[33].mxu0 }
 0xed5   :  { %v3495_v27 = vadd.f32 %v3847_v23, %v3494_v26 }
 0xed6   :  { %v5312_v28 = vadd.f32 %v3500_v25, %v5104_v51 }
 0xed7   :  { %v5315_v29 = vadd.f32 %v3495_v27, %v5107_v41 }
 0xed8   :  { %v3512_v30 = vsel %vm193_vm0, %v5312_v28, 0.0 }
 0xed9   :  { %3513 = vadd.xlane.f32.xlu1 %v3512_v30  ;;  %v3509_v6 = vsel %vm193_vm0, %v5315_v29, 0.0 }
 0xeda   :  { %3510 = vadd.xlane.f32.xlu0 %v3509_v6 }
 0xf66   :  { %v3514_v31 = vpop.xlane.xlu1 %3513 }
 0xf67   :  { %v3516_v32 = vmul.f32 0.03125, %v3514_v31  ;;  %v3511_v37 = vpop.xlane.xlu0 %3510  ;;  %v3857_v31 = vld [vmem:[%s5423_s18] ss:$0 sm:$0xff] }
 0xf68   :  { %v3515_v33 = vmul.f32 0.03125, %v3511_v37 }
 0xf69   :  { %v3518_v34 = vsub.f32 %v5312_v28, %v3516_v32 }
 0xf6a   :  { %v3517_v51 = vsub.f32 %v5315_v29, %v3515_v33 }
 0xf6b   :  { %v3520_v38 = vmul.f32 %v3518_v34, %v3518_v34  ;;  %v3536_v15 = vmul.f32 %v3850_v10, %v3518_v34 }
 0xf6c   :  { %v3519_v35 = vmul.f32 %v3517_v51, %v3517_v51  ;;  %v3535_v11 = vmul.f32 %v3850_v10, %v3517_v51 }
 0xf6d   :  { %v3524_v39 = vsel %vm193_vm0, %v3520_v38, 0.0 }
 0xf6e   :  { %v3521_v41 = vsel %vm193_vm0, %v3519_v35, 0.0 }
 0xf6f   :  { %3522 = vadd.xlane.f32.xlu0 %v3521_v41 }
 0xf73   :  { %3525 = vadd.xlane.f32.xlu0 %v3524_v39 }
 0xffc   :  { %v3523_v57 = vpop.xlane.xlu0 %3522 }
 0xffd   :  { %v3527_v58 = vmul.f32 0.032258064, %v3523_v57 }
 0xfff   :  { %4385 = vrsqrt.f32 %v3527_v58  ;;  %vm3539_vm2 = vcmp.eq.f32.partialorder %v3527_v58, inf  ;;  %v3542_v46 = vand.u32 2147483648, %v3527_v58  ;;  %vm3541_vm3 = vcmp.eq.f32.partialorder %v3527_v58, 0.0 }
0x1000   :  { %v3526_v59 = vpop.xlane.xlu0 %3525 }
0x1001   :  { %v3528_v36 = vmul.f32 0.032258064, %v3526_v59 }
0x1003   :  { %4387 = vrsqrt.f32 %v3528_v36  ;;  %vm3546_vm4 = vcmp.eq.f32.partialorder %v3528_v36, inf  ;;  %v3549_v5 = vand.u32 2147483648, %v3528_v36  ;;  %vm3548_vm5 = vcmp.eq.f32.partialorder %v3528_v36, 0.0 }
0x1009   :  { %v4386_v60 = vpop.eup %4385 }
0x100a   :  { %v3538_v61 = vmul.f32 %v4386_v60, %v3527_v58 }
0x100c   :  { %v3540_v62 = vsel %vm3539_vm2, %v3527_v58, %v3538_v61 }
0x100d   :  { %v4388_v63 = vpop.eup %4387  ;;  %v3543_v2 = vsel %vm3541_vm3, %v3542_v46, %v3540_v62 }
0x100e   :  { %v3545_v3 = vmul.f32 %v4388_v63, %v3528_v36  ;;  %v3551_v4 = vadd.f32 1e-06, %v3543_v2 }
0x1010   :  { %v3547_v7 = vsel %vm3546_vm4, %v3528_v36, %v3545_v3  ;;  %4389 = vrcp.f32 %v3551_v4 }
0x1011   :  { %v3550_v8 = vsel %vm3548_vm5, %v3549_v5, %v3547_v7 }
0x1012   :  { %v3552_v9 = vadd.f32 1e-06, %v3550_v8 }
0x1014   :  { %4391 = vrcp.f32 %v3552_v9 }
0x101a   :  { %v4390_v12 = vpop.eup %4389 }
0x101b   :  { %v3554_v14 = vmul.f32 %v4390_v12, %v3535_v11 }
0x101d   :  { %v3563_v16 = vadd.f32 %v3851_v13, %v3554_v14 }
0x101e   :  { %v4392_v17 = vpop.eup %4391 }
0x101f   :  { %v3556_v18 = vmul.f32 %v4392_v17, %v3536_v15  ;;  %4191 = vmatprep.mubr.msk.f32.mxu1 %vm193_vm0, %v3563_v16 }
0x1021   :  { %v3564_v19 = vadd.f32 %v3851_v13, %v3556_v18 }
0x1023   :  { %4192 = vmatmul.mubr.msk.f32.vlgmr.msra.gmra.mrb[40].mxu1 %vm193_vm0, %v3564_v19 }
0x10f6   :  { %v4193_v23 = vpop.f32.mrb[40].mxu1 }
0x10f7   :  { %v3654_v24 = vadd.f32 %v4193_v23, %v3852_v22  ;;  %v3648_v25 = vpop.f32.mrb[41].mxu1 }
0x10f8   :  { %v3649_v26 = vadd.f32 %v3852_v22, %v3648_v25 }
0x10f9   :  { %v3658_v30 = vmax.f32 %v3654_v24, 0.0 }
0x10fa   :  { %v3657_v27 = vmax.f32 %v3649_v26, 0.0 }
0x10fc   :  { %4210 = vmatprep.mubr.msk.f32.mxu0 %vm3667_vm6, %v3657_v27 }
0x10fd   :  { %4211 = vmatmul.mubr.msk.f32.vlgmr.msra.gmra.mrb[34].mxu0 %vm3667_vm6, %v3658_v30 }
0x11d0   :  { %v4212_v6 = vpop.f32.mrb[34].mxu0 }
0x11d1   :  { %v3750_v32 = vadd.f32 %v4212_v6, %v5312_v28  ;;  %v3740_v37 = vpop.f32.mrb[35].mxu0 }
0x11d2   :  { %v3749_v33 = vadd.f32 %v3740_v37, %v5315_v29 }
0x11d3   :  { %v3759_v34 = vadd.f32 %v3857_v31, %v3750_v32 }
0x11d4   :  { %v3758_v51 = vadd.f32 %v3857_v31, %v3749_v33 }
0x11d5   :  { %3761 = vst.msk [vmem:[#allocation16 + $0x8] sm:$0xff] %vm193_vm0, %v3759_v34 }
0x11d6   :  { %3760 = vst.msk [vmem:[#allocation16] sm:$0xff] %vm193_vm0, %v3758_v51 }
0x11d7   :  { %4580 = shalt.err (!%p4577_p12)
}
0x11d8   :  { %s5424_s24 = sld [smem:[#allocation29_spill]] }
0x11de   :  { %s4581_s11 = scalar_lea.hbm %s5424_s24, 256 }
0x11df   :  { %p4582_p13 = scmp.ne.s32.totalorder %s5424_s24, %s4581_s11  ;;  %p4585_p0 = scmp.lt.u32.totalorder %s4581_s11, %s5424_s24 }
0x11e1   :  { %p4587_p1 = pnand %p4585_p0, %p4582_p13 }
0x11e3   :  { %4590 = shalt.err (!%p4587_p1)
}
0x11e4   :  { %3773 = dma.vmem_to_hbm [thread:$0]  %s3768_s10, 256, %s5424_s24, [#allocation4], %s5422_s22, %s5422_s22, %s4606_s21  }
0x11e5   :  { %4601 = dma.done.wait [#allocation4], 256  }
0x11e6   :  { %4602 = vsyncadd [#allocation4], 4294967040 }
0x11e7   :  { %3777 = vsyncpa [#allocation3], 1 }
0x11e8   :  { %3778 = vsyncpa [#allocation6], 1 }
0x11e9   :  { %3779 = vsyncpa [#allocation9], 1 }
0x11ea   :  { %3780 = vsyncpa [#allocation12], 1 }
0x11eb   :  { %3781 = vsyncpa [#allocation15], 1 }
0x11ec   :  { %3782 = vsyncpa [#allocation4], 1 }

</bundles_post_ra>
